<compile_context>
chip_gen: v6e
topology: v6e:2x2x1
jax: 0.10.0
libtpu: 0.0.40
codegen_flags: <defaults>
</compile_context>

<pallas_src>
import functools

import jax
import jax.numpy as jnp
from jax.experimental import pallas as pl
from jax.experimental.pallas import tpu as pltpu

# ---- Module hyperparameters (small, consistent with the PyTorch module) ----
OBS_DIM = 32
ACT_DIM = 8
N_SHARED_LAYERS = 2          # shared_net: N linears, each followed by Tanh
SHARED_LAYER_SIZE = 64
N_PRIMITIVES = 4
N_PRIMITIVE_LAYERS = 2       # each primitive: N hidden linears (+Tanh) + final linear -> 2*act_dim
PRIMITIVE_LAYER_SIZE = 64

BATCH = 256                  # amortizes launch/DMA overhead and fills the MXU M dim
BATCH_TILE = 128             # per-grid-step rows; 2 parallel tiles -> both v7x TCs usable

OUT_WIDTH = N_PRIMITIVES * 2 * ACT_DIM   # 64 useful output columns
OUT_PAD = 128                            # lane-dense padded output width (unmasked vst)

PARAM_DTYPE = jnp.bfloat16               # halve parameter DMA, native MXU dtype


# ---------------------------------------------------------------------------
# Pallas kernel: full MCP forward for one batch tile, dense per-primitive dots.
# ---------------------------------------------------------------------------
def _mcp_kernel(obs_ref, sh_ref, pw_ref, ow_ref, out_ref, *,
                shared_layout, prim_layout, out_layout):
    # layouts are tuples of static (weight_row_offset, in_rows, bias_row_offset)
    # into the corresponding packed parameter buffer. Weight offsets are 8-aligned.
    f32 = jnp.float32
    h = obs_ref[...].astype(PARAM_DTYPE)

    # ---- shared_net: Linear -> Tanh, repeated ----
    for w_off, w_rows, b_off in shared_layout:
        w = sh_ref[w_off:w_off + w_rows, :]                       # (in, shared) bf16
        b = sh_ref[b_off:b_off + 1, :].astype(f32)                # (1, shared)
        h = jnp.tanh(jnp.dot(h, w, preferred_element_type=f32) + b)
        h = h.astype(PARAM_DTYPE)

    # ---- primitive hidden layers: P independent dense (tile,64)@(64,64) dots ----
    zs = [h] * N_PRIMITIVES
    for w_off, in_rows, b_off in prim_layout:
        nxt = []
        for p in range(N_PRIMITIVES):
            w = pw_ref[w_off + p * in_rows: w_off + (p + 1) * in_rows, :]   # (64, 64)
            b = pw_ref[b_off + p: b_off + p + 1, :].astype(f32)             # (1, 64)
            z = jnp.tanh(jnp.dot(zs[p], w, preferred_element_type=f32) + b)
            nxt.append(z.astype(PARAM_DTYPE))
        zs = nxt

    # ---- final per-primitive Linear -> 2*act_dim (no activation) ----
    w_off, in_rows, b_off = out_layout
    outs = []
    for p in range(N_PRIMITIVES):
        w = ow_ref[w_off + p * in_rows: w_off + (p + 1) * in_rows, :]       # (64, 2*act)
        b = ow_ref[b_off + p: b_off + p + 1, :].astype(f32)                 # (1, 2*act)
        outs.append(jnp.dot(zs[p], w, preferred_element_type=f32) + b)

    out = jnp.concatenate(outs, axis=1)                  # (tile, P*2*act) = (tile, 64)
    pad = OUT_PAD - out.shape[1]
    if pad:
        out = jnp.concatenate(
            [out, jnp.zeros((out.shape[0], pad), f32)], axis=1)
    out_ref[...] = out                                   # single unmasked 128-lane store


# ---------------------------------------------------------------------------
# Parameter init (deterministic, PyTorch-Linear-style uniform bounds).
# ---------------------------------------------------------------------------
def _linear_init(key, fan_in, fan_out):
    kw, kb = jax.random.split(key)
    bound = 1.0 / jnp.sqrt(float(fan_in))
    w = jax.random.uniform(kw, (fan_in, fan_out), jnp.float32, -bound, bound)
    b = jax.random.uniform(kb, (fan_out,), jnp.float32, -bound, bound)
    return w, b


def init_params(key):
    keys = jax.random.split(key, 64)
    ki = iter(keys)

    shared = []
    in_dim = OBS_DIM
    for _ in range(N_SHARED_LAYERS):
        shared.append(_linear_init(next(ki), in_dim, SHARED_LAYER_SIZE))
        in_dim = SHARED_LAYER_SIZE

    # Per-primitive weights stacked along a leading primitive axis.
    prim = []
    in_dim = SHARED_LAYER_SIZE
    for _ in range(N_PRIMITIVE_LAYERS):
        ws, bs = zip(*[_linear_init(next(ki), in_dim, PRIMITIVE_LAYER_SIZE)
                       for _ in range(N_PRIMITIVES)])
        prim.append((jnp.stack(ws, 0), jnp.stack(bs, 0)))
        in_dim = PRIMITIVE_LAYER_SIZE
    ws, bs = zip(*[_linear_init(next(ki), in_dim, 2 * ACT_DIM)
                   for _ in range(N_PRIMITIVES)])
    prim.append((jnp.stack(ws, 0), jnp.stack(bs, 0)))
    return shared, prim


# ---------------------------------------------------------------------------
# One-time parameter packing: dense, bf16, 8-aligned rows, 3 buffers by width.
# ---------------------------------------------------------------------------
def _pack_rows(pieces, width, dtype=PARAM_DTYPE):
    """Vertically pack equal-width 2D pieces, each starting on an 8-aligned row
    so in-kernel static slices stay sublane-aligned (no relayout)."""
    blocks, offsets, row = [], [], 0
    for p in pieces:
        assert p.shape[1] == width
        p = jnp.asarray(p, dtype=dtype)
        offsets.append(row)
        pad = (-p.shape[0]) % 8
        if pad:
            p = jnp.concatenate([p, jnp.zeros((pad, width), dtype)], axis=0)
        blocks.append(p)
        row += p.shape[0]
    return jnp.concatenate(blocks, axis=0), offsets


def pack_params(shared_params, prim_params):
    # Shared pack (width = SHARED_LAYER_SIZE): W0, b0, W1, b1, ...
    pieces = []
    for w, b in shared_params:
        pieces += [w, b.reshape(1, -1)]
    sh_pack, sh_off = _pack_rows(pieces, SHARED_LAYER_SIZE)
    shared_layout = tuple(
        (sh_off[2 * i], shared_params[i][0].shape[0], sh_off[2 * i + 1])
        for i in range(len(shared_params)))

    # Primitive hidden pack (width = PRIMITIVE_LAYER_SIZE): per layer, the P
    # per-primitive weights row-stacked densely (P*in, 64) + bias block (P, 64).
    pieces, in_dims = [], []
    for l in range(N_PRIMITIVE_LAYERS):
        ws, bs = prim_params[l]                           # (P, in, 64), (P, 64)
        pieces += [ws.reshape(-1, PRIMITIVE_LAYER_SIZE), bs]
        in_dims.append(ws.shape[1])
    pw_pack, pw_off = _pack_rows(pieces, PRIMITIVE_LAYER_SIZE)
    prim_layout = tuple(
        (pw_off[2 * l], in_dims[l], pw_off[2 * l + 1])
        for l in range(N_PRIMITIVE_LAYERS))

    # Output pack (width = 2*ACT_DIM): row-stacked (P*in, 2*act) + bias block (P, 2*act).
    ws, bs = prim_params[-1]                              # (P, in, 2*act), (P, 2*act)
    ow_pack, ow_off = _pack_rows([ws.reshape(-1, 2 * ACT_DIM), bs], 2 * ACT_DIM)
    out_layout = (ow_off[0], ws.shape[1], ow_off[1])

    return (sh_pack, pw_pack, ow_pack), (shared_layout, prim_layout, out_layout)


# ---------------------------------------------------------------------------
# Wrapper: builds specs and calls pallas_call.
# ---------------------------------------------------------------------------
def mcp_forward(obs, packed, layouts):
    sh_pack, pw_pack, ow_pack = packed
    shared_layout, prim_layout, out_layout = layouts
    B = obs.shape[0]
    bt = BATCH_TILE if B % BATCH_TILE == 0 else B          # small-batch fallback: one tile
    assert B % bt == 0

    kernel = functools.partial(
        _mcp_kernel,
        shared_layout=shared_layout,
        prim_layout=prim_layout,
        out_layout=out_layout,
    )

    raw = pl.pallas_call(
        kernel,
        out_shape=jax.ShapeDtypeStruct((B, OUT_PAD), jnp.float32),
        grid=(B // bt,),
        in_specs=[
            pl.BlockSpec((bt, OBS_DIM), lambda i: (i, 0)),
            pl.BlockSpec(sh_pack.shape, lambda i: (0, 0)),  # grid-invariant params
            pl.BlockSpec(pw_pack.shape, lambda i: (0, 0)),  # (fetched once; index unchanged)
            pl.BlockSpec(ow_pack.shape, lambda i: (0, 0)),
        ],
        out_specs=pl.BlockSpec((bt, OUT_PAD), lambda i: (i, 0)),
        compiler_params=pltpu.CompilerParams(
            dimension_semantics=("parallel",)),             # megacore-shardable on v7x
    )(obs, sh_pack, pw_pack, ow_pack)

    # torch.split(..., act_dim, dim=-1) + torch.stack(..., dim=-2), done for free
    # in the wrapper on the lane-dense (padded) kernel output.
    raw = raw[:, :OUT_WIDTH].reshape(B, N_PRIMITIVES, 2 * ACT_DIM)
    return raw[..., :ACT_DIM], raw[..., ACT_DIM:]


# ---------------------------------------------------------------------------
# Pure-JAX f32 reference (mirrors the PyTorch forward) for correctness check.
# ---------------------------------------------------------------------------
def mcp_reference(obs, shared_params, prim_params):
    h = obs
    for w, b in shared_params:
        h = jnp.tanh(h @ w + b)
    means, log_stds = [], []
    for p in range(N_PRIMITIVES):
        z = h
        for l in range(N_PRIMITIVE_LAYERS):
            w, b = prim_params[l]
            z = jnp.tanh(z @ w[p] + b[p])
        w, b = prim_params[-1]
        out = z @ w[p] + b[p]
        means.append(out[:, :ACT_DIM])
        log_stds.append(out[:, ACT_DIM:])
    return jnp.stack(means, axis=-2), jnp.stack(log_stds, axis=-2)


if __name__ == "__main__":
    key = jax.random.PRNGKey(0)
    k_obs, k_params = jax.random.split(key)

    obs = jax.random.normal(k_obs, (BATCH, OBS_DIM), jnp.float32)
    shared_params, prim_params = init_params(k_params)
    packed, layouts = pack_params(shared_params, prim_params)

    means, log_stds = mcp_forward(obs, packed, layouts)
    jax.block_until_ready((means, log_stds))

    ref_means, ref_log_stds = mcp_reference(obs, shared_params, prim_params)
    assert means.shape == (BATCH, N_PRIMITIVES, ACT_DIM)
    assert log_stds.shape == (BATCH, N_PRIMITIVES, ACT_DIM)
    # bf16 parameters/activations vs f32 reference -> relaxed tolerances.
    assert jnp.allclose(means, ref_means, atol=3e-2, rtol=3e-2)
    assert jnp.allclose(log_stds, ref_log_stds, atol=3e-2, rtol=3e-2)

    print("KERNEL_OK")
</pallas_src>

<mosaic_0001>
module attributes {stable_mosaic.version = 11 : i64} {
  func.func @_mcp_kernel(%arg0: i32, %arg1: memref<128x32xf32, #tpu.memory_space<vmem>>, %arg2: memref<112x64xbf16, #tpu.memory_space<vmem>>, %arg3: memref<528x64xbf16, #tpu.memory_space<vmem>>, %arg4: memref<264x16xbf16, #tpu.memory_space<vmem>>, %arg5: memref<128x128xf32, #tpu.memory_space<vmem>>) attributes {dimension_semantics = [#tpu.dimension_semantics<parallel>], iteration_bounds = array<i64: 2>, scalar_prefetch = 0 : i64, scratch_operands = 0 : i64, tpu.core_type = #tpu.core_type<tc>, window_params = [{transform_indices = @transform_0, window_bounds = array<i64: 128, 32>}, {pipeline_mode = #tpu.pipeline_mode<synchronous>, transform_indices = @transform_1, window_bounds = array<i64: 112, 64>}, {pipeline_mode = #tpu.pipeline_mode<synchronous>, transform_indices = @transform_2, window_bounds = array<i64: 528, 64>}, {pipeline_mode = #tpu.pipeline_mode<synchronous>, transform_indices = @transform_3, window_bounds = array<i64: 264, 16>}, {transform_indices = @transform_4, window_bounds = array<i64: 128, 128>}]} {
    %c0 = arith.constant 0 : index
    %c0_0 = arith.constant 0 : index
    %0 = vector.load %arg1[%c0, %c0_0] : memref<128x32xf32, #tpu.memory_space<vmem>>, vector<128x32xf32>
    %1 = arith.truncf %0 : vector<128x32xf32> to vector<128x32xbf16>
    %c0_1 = arith.constant 0 : index
    %c0_2 = arith.constant 0 : index
    %2 = vector.load %arg2[%c0_1, %c0_2] : memref<112x64xbf16, #tpu.memory_space<vmem>>, vector<32x64xbf16>
    %c32 = arith.constant 32 : index
    %c0_3 = arith.constant 0 : index
    %3 = vector.load %arg2[%c32, %c0_3] : memref<112x64xbf16, #tpu.memory_space<vmem>>, vector<1x64xbf16>
    %4 = arith.extf %3 : vector<1x64xbf16> to vector<1x64xf32>
    %cst = arith.constant dense<0.000000e+00> : vector<128x64xf32>
    %5 = tpu.matmul %1, %2, %cst {dimension_numbers = #tpu.dot_dimension_numbers<[1], [0], [0], [1], [0, 0, 1, 1], [], []>} : vector<128x32xbf16>, vector<32x64xbf16>, vector<128x64xf32> -> vector<128x64xf32>
    %6 = vector.broadcast %4 : vector<1x64xf32> to vector<128x64xf32>
    %7 = arith.addf %5, %6 : vector<128x64xf32>
    %8 = math.tanh %7 : vector<128x64xf32>
    %9 = arith.truncf %8 : vector<128x64xf32> to vector<128x64xbf16>
    %c40 = arith.constant 40 : index
    %c0_4 = arith.constant 0 : index
    %10 = vector.load %arg2[%c40, %c0_4] : memref<112x64xbf16, #tpu.memory_space<vmem>>, vector<64x64xbf16>
    %c104 = arith.constant 104 : index
    %c0_5 = arith.constant 0 : index
    %11 = vector.load %arg2[%c104, %c0_5] : memref<112x64xbf16, #tpu.memory_space<vmem>>, vector<1x64xbf16>
    %12 = arith.extf %11 : vector<1x64xbf16> to vector<1x64xf32>
    %cst_6 = arith.constant dense<0.000000e+00> : vector<128x64xf32>
    %13 = tpu.matmul %9, %10, %cst_6 {dimension_numbers = #tpu.dot_dimension_numbers<[1], [0], [0], [1], [0, 0, 1, 1], [], []>} : vector<128x64xbf16>, vector<64x64xbf16>, vector<128x64xf32> -> vector<128x64xf32>
    %14 = vector.broadcast %12 : vector<1x64xf32> to vector<128x64xf32>
    %15 = arith.addf %13, %14 : vector<128x64xf32>
    %16 = math.tanh %15 : vector<128x64xf32>
    %17 = arith.truncf %16 : vector<128x64xf32> to vector<128x64xbf16>
    %c0_7 = arith.constant 0 : index
    %c0_8 = arith.constant 0 : index
    %18 = vector.load %arg3[%c0_7, %c0_8] : memref<528x64xbf16, #tpu.memory_space<vmem>>, vector<64x64xbf16>
    %c256 = arith.constant 256 : index
    %c0_9 = arith.constant 0 : index
    %19 = vector.load %arg3[%c256, %c0_9] : memref<528x64xbf16, #tpu.memory_space<vmem>>, vector<1x64xbf16>
    %20 = arith.extf %19 : vector<1x64xbf16> to vector<1x64xf32>
    %cst_10 = arith.constant dense<0.000000e+00> : vector<128x64xf32>
    %21 = tpu.matmul %17, %18, %cst_10 {dimension_numbers = #tpu.dot_dimension_numbers<[1], [0], [0], [1], [0, 0, 1, 1], [], []>} : vector<128x64xbf16>, vector<64x64xbf16>, vector<128x64xf32> -> vector<128x64xf32>
    %22 = vector.broadcast %20 : vector<1x64xf32> to vector<128x64xf32>
    %23 = arith.addf %21, %22 : vector<128x64xf32>
    %24 = math.tanh %23 : vector<128x64xf32>
    %25 = arith.truncf %24 : vector<128x64xf32> to vector<128x64xbf16>
    %c64 = arith.constant 64 : index
    %c0_11 = arith.constant 0 : index
    %26 = vector.load %arg3[%c64, %c0_11] : memref<528x64xbf16, #tpu.memory_space<vmem>>, vector<64x64xbf16>
    %c257 = arith.constant 257 : index
    %c0_12 = arith.constant 0 : index
    %27 = vector.load %arg3[%c257, %c0_12] : memref<528x64xbf16, #tpu.memory_space<vmem>>, vector<1x64xbf16>
    %28 = arith.extf %27 : vector<1x64xbf16> to vector<1x64xf32>
    %cst_13 = arith.constant dense<0.000000e+00> : vector<128x64xf32>
    %29 = tpu.matmul %17, %26, %cst_13 {dimension_numbers = #tpu.dot_dimension_numbers<[1], [0], [0], [1], [0, 0, 1, 1], [], []>} : vector<128x64xbf16>, vector<64x64xbf16>, vector<128x64xf32> -> vector<128x64xf32>
    %30 = vector.broadcast %28 : vector<1x64xf32> to vector<128x64xf32>
    %31 = arith.addf %29, %30 : vector<128x64xf32>
    %32 = math.tanh %31 : vector<128x64xf32>
    %33 = arith.truncf %32 : vector<128x64xf32> to vector<128x64xbf16>
    %c128 = arith.constant 128 : index
    %c0_14 = arith.constant 0 : index
    %34 = vector.load %arg3[%c128, %c0_14] : memref<528x64xbf16, #tpu.memory_space<vmem>>, vector<64x64xbf16>
    %c258 = arith.constant 258 : index
    %c0_15 = arith.constant 0 : index
    %35 = vector.load %arg3[%c258, %c0_15] : memref<528x64xbf16, #tpu.memory_space<vmem>>, vector<1x64xbf16>
    %36 = arith.extf %35 : vector<1x64xbf16> to vector<1x64xf32>
    %cst_16 = arith.constant dense<0.000000e+00> : vector<128x64xf32>
    %37 = tpu.matmul %17, %34, %cst_16 {dimension_numbers = #tpu.dot_dimension_numbers<[1], [0], [0], [1], [0, 0, 1, 1], [], []>} : vector<128x64xbf16>, vector<64x64xbf16>, vector<128x64xf32> -> vector<128x64xf32>
    %38 = vector.broadcast %36 : vector<1x64xf32> to vector<128x64xf32>
    %39 = arith.addf %37, %38 : vector<128x64xf32>
    %40 = math.tanh %39 : vector<128x64xf32>
    %41 = arith.truncf %40 : vector<128x64xf32> to vector<128x64xbf16>
    %c192 = arith.constant 192 : index
    %c0_17 = arith.constant 0 : index
    %42 = vector.load %arg3[%c192, %c0_17] : memref<528x64xbf16, #tpu.memory_space<vmem>>, vector<64x64xbf16>
    %c259 = arith.constant 259 : index
    %c0_18 = arith.constant 0 : index
    %43 = vector.load %arg3[%c259, %c0_18] : memref<528x64xbf16, #tpu.memory_space<vmem>>, vector<1x64xbf16>
    %44 = arith.extf %43 : vector<1x64xbf16> to vector<1x64xf32>
    %cst_19 = arith.constant dense<0.000000e+00> : vector<128x64xf32>
    %45 = tpu.matmul %17, %42, %cst_19 {dimension_numbers = #tpu.dot_dimension_numbers<[1], [0], [0], [1], [0, 0, 1, 1], [], []>} : vector<128x64xbf16>, vector<64x64xbf16>, vector<128x64xf32> -> vector<128x64xf32>
    %46 = vector.broadcast %44 : vector<1x64xf32> to vector<128x64xf32>
    %47 = arith.addf %45, %46 : vector<128x64xf32>
    %48 = math.tanh %47 : vector<128x64xf32>
    %49 = arith.truncf %48 : vector<128x64xf32> to vector<128x64xbf16>
    %c264 = arith.constant 264 : index
    %c0_20 = arith.constant 0 : index
    %50 = vector.load %arg3[%c264, %c0_20] : memref<528x64xbf16, #tpu.memory_space<vmem>>, vector<64x64xbf16>
    %c520 = arith.constant 520 : index
    %c0_21 = arith.constant 0 : index
    %51 = vector.load %arg3[%c520, %c0_21] : memref<528x64xbf16, #tpu.memory_space<vmem>>, vector<1x64xbf16>
    %52 = arith.extf %51 : vector<1x64xbf16> to vector<1x64xf32>
    %cst_22 = arith.constant dense<0.000000e+00> : vector<128x64xf32>
    %53 = tpu.matmul %25, %50, %cst_22 {dimension_numbers = #tpu.dot_dimension_numbers<[1], [0], [0], [1], [0, 0, 1, 1], [], []>} : vector<128x64xbf16>, vector<64x64xbf16>, vector<128x64xf32> -> vector<128x64xf32>
    %54 = vector.broadcast %52 : vector<1x64xf32> to vector<128x64xf32>
    %55 = arith.addf %53, %54 : vector<128x64xf32>
    %56 = math.tanh %55 : vector<128x64xf32>
    %57 = arith.truncf %56 : vector<128x64xf32> to vector<128x64xbf16>
    %c328 = arith.constant 328 : index
    %c0_23 = arith.constant 0 : index
    %58 = vector.load %arg3[%c328, %c0_23] : memref<528x64xbf16, #tpu.memory_space<vmem>>, vector<64x64xbf16>
    %c521 = arith.constant 521 : index
    %c0_24 = arith.constant 0 : index
    %59 = vector.load %arg3[%c521, %c0_24] : memref<528x64xbf16, #tpu.memory_space<vmem>>, vector<1x64xbf16>
    %60 = arith.extf %59 : vector<1x64xbf16> to vector<1x64xf32>
    %cst_25 = arith.constant dense<0.000000e+00> : vector<128x64xf32>
    %61 = tpu.matmul %33, %58, %cst_25 {dimension_numbers = #tpu.dot_dimension_numbers<[1], [0], [0], [1], [0, 0, 1, 1], [], []>} : vector<128x64xbf16>, vector<64x64xbf16>, vector<128x64xf32> -> vector<128x64xf32>
    %62 = vector.broadcast %60 : vector<1x64xf32> to vector<128x64xf32>
    %63 = arith.addf %61, %62 : vector<128x64xf32>
    %64 = math.tanh %63 : vector<128x64xf32>
    %65 = arith.truncf %64 : vector<128x64xf32> to vector<128x64xbf16>
    %c392 = arith.constant 392 : index
    %c0_26 = arith.constant 0 : index
    %66 = vector.load %arg3[%c392, %c0_26] : memref<528x64xbf16, #tpu.memory_space<vmem>>, vector<64x64xbf16>
    %c522 = arith.constant 522 : index
    %c0_27 = arith.constant 0 : index
    %67 = vector.load %arg3[%c522, %c0_27] : memref<528x64xbf16, #tpu.memory_space<vmem>>, vector<1x64xbf16>
    %68 = arith.extf %67 : vector<1x64xbf16> to vector<1x64xf32>
    %cst_28 = arith.constant dense<0.000000e+00> : vector<128x64xf32>
    %69 = tpu.matmul %41, %66, %cst_28 {dimension_numbers = #tpu.dot_dimension_numbers<[1], [0], [0], [1], [0, 0, 1, 1], [], []>} : vector<128x64xbf16>, vector<64x64xbf16>, vector<128x64xf32> -> vector<128x64xf32>
    %70 = vector.broadcast %68 : vector<1x64xf32> to vector<128x64xf32>
    %71 = arith.addf %69, %70 : vector<128x64xf32>
    %72 = math.tanh %71 : vector<128x64xf32>
    %73 = arith.truncf %72 : vector<128x64xf32> to vector<128x64xbf16>
    %c456 = arith.constant 456 : index
    %c0_29 = arith.constant 0 : index
    %74 = vector.load %arg3[%c456, %c0_29] : memref<528x64xbf16, #tpu.memory_space<vmem>>, vector<64x64xbf16>
    %c523 = arith.constant 523 : index
    %c0_30 = arith.constant 0 : index
    %75 = vector.load %arg3[%c523, %c0_30] : memref<528x64xbf16, #tpu.memory_space<vmem>>, vector<1x64xbf16>
    %76 = arith.extf %75 : vector<1x64xbf16> to vector<1x64xf32>
    %cst_31 = arith.constant dense<0.000000e+00> : vector<128x64xf32>
    %77 = tpu.matmul %49, %74, %cst_31 {dimension_numbers = #tpu.dot_dimension_numbers<[1], [0], [0], [1], [0, 0, 1, 1], [], []>} : vector<128x64xbf16>, vector<64x64xbf16>, vector<128x64xf32> -> vector<128x64xf32>
    %78 = vector.broadcast %76 : vector<1x64xf32> to vector<128x64xf32>
    %79 = arith.addf %77, %78 : vector<128x64xf32>
    %80 = math.tanh %79 : vector<128x64xf32>
    %81 = arith.truncf %80 : vector<128x64xf32> to vector<128x64xbf16>
    %c0_32 = arith.constant 0 : index
    %c0_33 = arith.constant 0 : index
    %82 = vector.load %arg4[%c0_32, %c0_33] : memref<264x16xbf16, #tpu.memory_space<vmem>>, vector<64x16xbf16>
    %c256_34 = arith.constant 256 : index
    %c0_35 = arith.constant 0 : index
    %83 = vector.load %arg4[%c256_34, %c0_35] : memref<264x16xbf16, #tpu.memory_space<vmem>>, vector<1x16xbf16>
    %84 = arith.extf %83 : vector<1x16xbf16> to vector<1x16xf32>
    %cst_36 = arith.constant dense<0.000000e+00> : vector<128x16xf32>
    %85 = tpu.matmul %57, %82, %cst_36 {dimension_numbers = #tpu.dot_dimension_numbers<[1], [0], [0], [1], [0, 0, 1, 1], [], []>} : vector<128x64xbf16>, vector<64x16xbf16>, vector<128x16xf32> -> vector<128x16xf32>
    %86 = vector.broadcast %84 : vector<1x16xf32> to vector<128x16xf32>
    %87 = arith.addf %85, %86 : vector<128x16xf32>
    %c64_37 = arith.constant 64 : index
    %c0_38 = arith.constant 0 : index
    %88 = vector.load %arg4[%c64_37, %c0_38] : memref<264x16xbf16, #tpu.memory_space<vmem>>, vector<64x16xbf16>
    %c257_39 = arith.constant 257 : index
    %c0_40 = arith.constant 0 : index
    %89 = vector.load %arg4[%c257_39, %c0_40] : memref<264x16xbf16, #tpu.memory_space<vmem>>, vector<1x16xbf16>
    %90 = arith.extf %89 : vector<1x16xbf16> to vector<1x16xf32>
    %cst_41 = arith.constant dense<0.000000e+00> : vector<128x16xf32>
    %91 = tpu.matmul %65, %88, %cst_41 {dimension_numbers = #tpu.dot_dimension_numbers<[1], [0], [0], [1], [0, 0, 1, 1], [], []>} : vector<128x64xbf16>, vector<64x16xbf16>, vector<128x16xf32> -> vector<128x16xf32>
    %92 = vector.broadcast %90 : vector<1x16xf32> to vector<128x16xf32>
    %93 = arith.addf %91, %92 : vector<128x16xf32>
    %c128_42 = arith.constant 128 : index
    %c0_43 = arith.constant 0 : index
    %94 = vector.load %arg4[%c128_42, %c0_43] : memref<264x16xbf16, #tpu.memory_space<vmem>>, vector<64x16xbf16>
    %c258_44 = arith.constant 258 : index
    %c0_45 = arith.constant 0 : index
    %95 = vector.load %arg4[%c258_44, %c0_45] : memref<264x16xbf16, #tpu.memory_space<vmem>>, vector<1x16xbf16>
    %96 = arith.extf %95 : vector<1x16xbf16> to vector<1x16xf32>
    %cst_46 = arith.constant dense<0.000000e+00> : vector<128x16xf32>
    %97 = tpu.matmul %73, %94, %cst_46 {dimension_numbers = #tpu.dot_dimension_numbers<[1], [0], [0], [1], [0, 0, 1, 1], [], []>} : vector<128x64xbf16>, vector<64x16xbf16>, vector<128x16xf32> -> vector<128x16xf32>
    %98 = vector.broadcast %96 : vector<1x16xf32> to vector<128x16xf32>
    %99 = arith.addf %97, %98 : vector<128x16xf32>
    %c192_47 = arith.constant 192 : index
    %c0_48 = arith.constant 0 : index
    %100 = vector.load %arg4[%c192_47, %c0_48] : memref<264x16xbf16, #tpu.memory_space<vmem>>, vector<64x16xbf16>
    %c259_49 = arith.constant 259 : index
    %c0_50 = arith.constant 0 : index
    %101 = vector.load %arg4[%c259_49, %c0_50] : memref<264x16xbf16, #tpu.memory_space<vmem>>, vector<1x16xbf16>
    %102 = arith.extf %101 : vector<1x16xbf16> to vector<1x16xf32>
    %cst_51 = arith.constant dense<0.000000e+00> : vector<128x16xf32>
    %103 = tpu.matmul %81, %100, %cst_51 {dimension_numbers = #tpu.dot_dimension_numbers<[1], [0], [0], [1], [0, 0, 1, 1], [], []>} : vector<128x64xbf16>, vector<64x16xbf16>, vector<128x16xf32> -> vector<128x16xf32>
    %104 = vector.broadcast %102 : vector<1x16xf32> to vector<128x16xf32>
    %105 = arith.addf %103, %104 : vector<128x16xf32>
    %106 = tpu.concatenate %87, %93, %99, %105 in 1 : vector<128x16xf32>, vector<128x16xf32>, vector<128x16xf32>, vector<128x16xf32> -> vector<128x64xf32>
    %cst_52 = arith.constant 0.000000e+00 : f32
    %107 = vector.broadcast %cst_52 : f32 to vector<128x64xf32>
    %108 = tpu.concatenate %106, %107 in 1 : vector<128x64xf32>, vector<128x64xf32> -> vector<128x128xf32>
    %c0_53 = arith.constant 0 : index
    %c0_54 = arith.constant 0 : index
    %109 = vector.load %arg5[%c0_53, %c0_54] : memref<128x128xf32, #tpu.memory_space<vmem>>, vector<128x128xf32>
    tpu.vector_store %arg5[%c0_53, %c0_54], %108 {strides = array<i32>} : memref<128x128xf32, #tpu.memory_space<vmem>>, vector<128x128xf32>,
    return
  }
  func.func @transform_0(%arg0: i32) -> (i32, i32) {
    %c0_i32 = arith.constant 0 : i32
    %c0_i32_0 = arith.constant 0 : i32
    return %arg0, %c0_i32 : i32, i32
  }
  func.func @transform_1(%arg0: i32) -> (i32, i32) {
    %c0_i32 = arith.constant 0 : i32
    %c0_i32_0 = arith.constant 0 : i32
    %c0_i32_1 = arith.constant 0 : i32
    return %c0_i32, %c0_i32_0 : i32, i32
  }
  func.func @transform_2(%arg0: i32) -> (i32, i32) {
    %c0_i32 = arith.constant 0 : i32
    %c0_i32_0 = arith.constant 0 : i32
    %c0_i32_1 = arith.constant 0 : i32
    return %c0_i32, %c0_i32_0 : i32, i32
  }
  func.func @transform_3(%arg0: i32) -> (i32, i32) {
    %c0_i32 = arith.constant 0 : i32
    %c0_i32_0 = arith.constant 0 : i32
    %c0_i32_1 = arith.constant 0 : i32
    return %c0_i32, %c0_i32_0 : i32, i32
  }
  func.func @transform_4(%arg0: i32) -> (i32, i32) {
    %c0_i32 = arith.constant 0 : i32
    %c0_i32_0 = arith.constant 0 : i32
    return %arg0, %c0_i32 : i32, i32
  }
}

</mosaic_0001>

<bundles_post_ra>
// kernel: tpu_custom_call.1
= control target key start
LH: loop header
LB: loop body
LE: loop exit
PB: predicated region body
PF: predicated region fallthrough
CT: control target
= control target key end

     0   :  { %9 = vsyncpa [#allocation3], 0  ;;  %s5062_s0 = inlined_call_operand.vmem [shape: f32[256,32], index: 0, kind: input, shape index: {}]   ;;  %s5063_s1 = inlined_call_operand.vmem [shape: bf16[112,64], index: 1, kind: input, shape index: {}]   ;;  %s5064_s2 = inlined_call_operand.vmem [shape: bf16[528,64], index: 2, kind: input, shape index: {}]   ;;  %s5065_s3 = inlined_call_operand.vmem [shape: bf16[264,16], index: 3, kind: input, shape index: {}]   ;;  %s5066_s4 = inlined_call_operand.hbm [shape: f32[256,128], index: 4, kind: output, shape index: {}]  }
   0x1   :  { %11 = vsyncpa [#allocation3 + $0x1], 0  ;;  %s4130_s15 = smov 0   ;;  %s4132_s16 = smov 0  }
   0x2   :  { %s4134_s17 = smov 0   ;;  %s4136_s18 = smov 0  }
   0x3 LB: > { %s4151_s19 = sadd.s32 4294967295, %s4097_s18   ;;  %s2942_s20 = sadd.s32 4294967294, %s4097_s18   ;;  %s4097_s18 = sphi %s4136_s18, %s5072_s18   ;;  %s4093_s17 = sphi %s4134_s17, %s5071_s17   ;;  %s4089_s16 = sphi %s4132_s16, %s5070_s16   ;;  %s4085_s15 = sphi %s4130_s15, %s5069_s15  }
   0x4   : > { %s4155_s21 = sadd.s32 1, %s4097_s18   ;;  %s113_s22 = sadd.s32 1, %s4093_s17 }
   0x5   : > { %s110_s23 = ssub.s32 %s4097_s18, %s4155_s21  ;;  %p123_p0 = scmp.ne.s32.totalorder %s4093_s17, %s4089_s16 }
   0x6   : > { %p111_p1 = scmp.eq.s32.totalorder %s110_s23, 0  ;;  %p124_p2 = scmp.eq.s32.totalorder %s4151_s19, 1 }
   0x7   : > { %p129_p3 = scmp.ne.s32.totalorder %s4089_s16, %s4085_s15  ;;  %p130_p4 = scmp.eq.s32.totalorder %s2942_s20, 1 }
   0x8   : > { %s4166_s24 = scalar_select %p111_p1, %s4093_s17, %s113_s22  }
   0x9   : > { %p4168_p5 = por %p124_p2, %p123_p0  ;;  %p4172_p6 = por %p130_p4, %p129_p3 }
   0xa   : > { %p2945_p7 = scmp.ge.s32.totalorder %s4097_s18, 1  ;;  %p166_p8 = scmp.lt.s32.totalorder %s4097_s18, 3 }
   0xc   : > { %p167_p9 = pnand %p2945_p7, %p166_p8 }
   0xd   : > { %s2947_s29 = sshll.u32 (!%p167_p9), %s4151_s19, 4  ;;  %s4100_s12 = smov (!%p167_p9), 32  }
   0xe   : > { %170 = sbr.rel (%p167_p9) target bundleno = 1323 (0x52b), region = 36  ;;  %p193_p10 = scmp.lt.s32.totalorder (!%p167_p9), %s2947_s29, 31 }
   0xf   : > { %s4101_s13 = smov (!%p167_p9), 48   ;;  %s189_s14 = sand.u32 (!%p167_p9), 1, %s4089_s16  }
  0x10   : > { %s2946_s20 = sshll.u32 (!%p167_p9), %s189_s14, 7  ;;  %s3120_s23 = sshll.u32 (!%p167_p9), %s4151_s19, 11 }
  0x11   : > { %s4903_s22 = scalar_lea.vmem (!%p167_p9), [#allocation2], %s2946_s20  ;;  %s5022_s30 = scalar_lea.sflag (!%p167_p9), [#allocation3], %s189_s14 }
  0x12   : > { %s2880_s27 = sshll.u32 (!%p167_p9), %s4903_s22, 4  ;;  %s5014_s27 = int_to_ptr.vmem [resolvable:$true] %s2880_s27 }
  0x13   : > { %v3663_v0 = vld [vmem:[%s5063_s1 + $0x8] sm:$0xff]   ;;  %v3664_v1 = vld [vmem:[%s5063_s1] sm:$0xff]   ;;  %s5074_s29 = smov (!%p193_p10, %s2947_s29), 31  ;;  %vm246_vm0 = vcmask 261120   ;;  %v3668_v29 = vld [vmem:[%s5063_s1 + $0x14] sm:$0xff]   ;;  %v230_v32 = vlaneseq  ;;  %vm430_vm1 = vcmask 523264  }
  0x14   : > { %3287 = vmatprep.subr.bf16.mxu0 %v3663_v0  ;;  %s2948_s6 = sshll.u32 %s5074_s29, 3  ;;  %v3665_v26 = vld [vmem:[%s5063_s1 + $0x2c] sm:$0xff]   ;;  %v3666_v27 = vld [vmem:[%s5063_s1 + $0x24] sm:$0xff]   ;;  %v3667_v28 = vld [vmem:[%s5063_s1 + $0x1c] sm:$0xff]   ;;  %vm2784_vm2 = vcmask 130048   ;;  %vm2817_vm3 = vcmask 392192   ;;  %s5012_s29 = scalar_lea.hbm %s5066_s4, %s3120_s23 }
  0x15   : > { %3288 = vmatpush3.bf16.msra.mxu0 %v3663_v0  ;;  %s196_s9 = scalar_lea.vmem %s5062_s0, %s2948_s6  ;;  %3307 = vmatprep.subr.bf16.mxu1 %v3665_v26  ;;  %v3669_v30 = vld [vmem:[%s5064_s2 + $0x18] sm:$0xff]   ;;  %v4214_v33 = vshrl.u32 %v230_v32, 7  ;;  %v228_v34 = vld [vmem:[%s5063_s1 + $0x10] sm:$0x1]  ;;  %v3673_v32 = vld [vmem:[%s5064_s2 + $0x8] sm:$0xff]   ;;  %s4037_s5 = scalar_lea.vmem %s5014_s27, 2048 }
  0x16   : > { %3289 = vmatprep.subr.bf16.mxu0 %v3664_v1  ;;  %v200_v2 = vld [vmem:[%s196_s9] sm:$0xff]  ;;  %v201_v3 = vld [vmem:[%s196_s9 + $0x8] sm:$0xff]  ;;  %v202_v4 = vld [vmem:[%s196_s9 + $0x10] sm:$0xff]  ;;  %3308 = vmatpush3.bf16.msra.mxu1 %v3665_v26  ;;  %v229_v35 = vunpack.c.l.bf16 %v228_v34  ;;  %p4038_p11 = scmp.ne.s32.totalorder %s5014_s27, %s4037_s5  ;;  %s4102_s6 = smov [#allocation2]  }
  0x17   : > { %v216_v5 = vpack.c.bf16 %v201_v3, %v200_v2  ;;  %v203_v6 = vld [vmem:[%s196_s9 + $0x18] sm:$0xff]  ;;  %v204_v7 = vld [vmem:[%s196_s9 + $0x20] sm:$0xff]  ;;  %v205_v8 = vld [vmem:[%s196_s9 + $0x28] sm:$0xff]  ;;  %3309 = vmatprep.subr.bf16.mxu1 %v3666_v27  ;;  %v4220_v36 = vsub.s32 0, %v4214_v33  ;;  %s4041_s7 = sshll.u32 %s4102_s6, 4  ;;  %s4042_s7 = int_to_ptr.vmem [resolvable:$false] %s4041_s7 }
  0x18   : > { %v217_v9 = vpack.c.bf16 %v203_v6, %v202_v4  ;;  %v218_v10 = vpack.c.bf16 %v205_v8, %v204_v7  ;;  %v206_v11 = vld [vmem:[%s196_s9 + $0x30] sm:$0xff]  ;;  %v207_v12 = vld [vmem:[%s196_s9 + $0x38] sm:$0xff]  ;;  %v208_v13 = vld [vmem:[%s196_s9 + $0x40] sm:$0xff]  ;;  %p4039_p12 = pnand %p4038_p11, %p4168_p5  ;;  %s4043_s8 = scalar_lea.vmem %s4042_s7, 4096 }
  0x19   : > { %3290 = vmatpush3.bf16.msra.mxu0 %v3664_v1  ;;  %3291 = vmatprep.mubr.msk.bf16.mxu0 %vm246_vm0, %v216_v5  ;;  %v209_v14 = vld [vmem:[%s196_s9 + $0x48] sm:$0xff]  ;;  %v219_v15 = vpack.c.bf16 %v207_v12, %v206_v11  ;;  %v210_v17 = vld [vmem:[%s196_s9 + $0x50] sm:$0xff]  ;;  %v211_v18 = vld [vmem:[%s196_s9 + $0x58] sm:$0xff]  ;;  %v233_v38 = vrot.slane %v229_v35, %v4220_v36  ;;  %p4044_p0 = scmp.lt.s32.totalorder %s5014_s27, %s4042_s7  ;;  %p4045_p1 = scmp.lt.s32.totalorder %s4043_s8, %s4037_s5 }
  0x1a   : > { %v220_v16 = vpack.c.bf16 %v209_v14, %v208_v13  ;;  %v212_v19 = vld [vmem:[%s196_s9 + $0x60] sm:$0xff]  ;;  %v213_v20 = vld [vmem:[%s196_s9 + $0x68] sm:$0xff]  ;;  %v221_v21 = vpack.c.bf16 %v211_v18, %v210_v17  ;;  %v214_v23 = vld [vmem:[%s196_s9 + $0x70] sm:$0xff]  ;;  %3310 = vmatpush3.bf16.msra.mxu1 %v3666_v27  ;;  %3331 = vmatprep.subr.bf16.mxu0 %v3669_v30  ;;  %p4040_p13 = pneg %p4039_p12 }
  0x1b   : > { %v222_v22 = vpack.c.bf16 %v213_v20, %v212_v19  ;;  %v215_v24 = vld [vmem:[%s196_s9 + $0x78] sm:$0xff]  ;;  %3311 = vmatprep.subr.bf16.mxu1 %v3667_v28  ;;  %v3674_v34 = vld [vmem:[%s5064_s2 + $0x28] sm:$0xff]   ;;  %v3675_v35 = vld [vmem:[%s5064_s2] sm:$0xff]   ;;  %s4099_s9 = smov 16   ;;  %p4046_p2 = por %p4045_p1, %p4044_p0 }
  0x1c   : > { %3292 = vmatmul.mubr.msk.bf16.vlgmr.msra.gmra.mxu0 %vm246_vm0, %v217_v9  ;;  %v223_v25 = vpack.c.bf16 %v215_v24, %v214_v23  ;;  %v3670_v31 = vld [vmem:[%s5064_s2 + $0x38] sm:$0xff]  }
  0x1d   : > { %3295 = vmatprep.mubr.msk.bf16.mxu0 %vm246_vm0, %v218_v10  ;;  %3332 = vmatpush3.bf16.msra.mxu0 %v3669_v30  ;;  %v3671_v30 = vld [vmem:[%s5064_s2 + $0x10] sm:$0xff]   ;;  %p4047_p3 = pnand %p4046_p2, %p4040_p13 }
  0x1e   : > { %3312 = vmatpush3.bf16.msra.mxu1 %v3667_v28  ;;  %3333 = vmatprep.subr.bf16.mxu0 %v3671_v30 }
  0x1f   : > { %3313 = vmatprep.subr.bf16.mxu1 %v3668_v29 }
  0x21   : > { %3334 = vmatpush3.bf16.msra.mxu0 %v3671_v30  ;;  %v3685_v30 = vld [vmem:[%s5064_s2 + $0x9c] sm:$0xff]  }
  0x22   : > { %3314 = vmatpush3.bf16.msra.mxu1 %v3668_v29  ;;  %3335 = vmatprep.subr.bf16.mxu0 %v3673_v32 }
  0x23   : > { %3355 = vmatprep.subr.bf16.mxu1 %v3670_v31 }
  0x24   : > { %3296 = vmatmul.mubr.msk.bf16.gmra.mxu0 %vm246_vm0, %v219_v15 }
  0x25   : > { %3299 = vmatprep.mubr.msk.bf16.mxu0 %vm246_vm0, %v220_v16  ;;  %3336 = vmatpush3.bf16.msra.mxu0 %v3673_v32 }
  0x26   : > { %3337 = vmatprep.subr.bf16.mxu0 %v3675_v35 }
  0x29   : > { %3338 = vmatpush3.bf16.msra.mxu0 %v3675_v35 }
  0x2c   : > { %3300 = vmatmul.mubr.msk.bf16.gmra.mxu0 %vm246_vm0, %v221_v21 }
  0x2d   : > { %3303 = vmatprep.mubr.msk.bf16.mxu0 %vm246_vm0, %v222_v22 }
  0x34   : > { %3304 = vmatmul.mubr.msk.bf16.gmra.mxu0 %vm246_vm0, %v223_v25 }
  0xdc   : > { %v3293_v37 = vpop.f32.mrf.mxu0 }
  0xdd   : > { %v314_v43 = vadd.f32 %v3293_v37, %v233_v38  ;;  %v3676_v37 = vld [vmem:[%s5064_s2 + $0x20] sm:$0xff]  }
  0xde   : > { %v305_v39 = vpop.f32.mrf.mxu0 }
  0xdf   : > { %v306_v40 = vadd.f32 %v305_v39, %v233_v38  ;;  %v3678_v39 = vld [vmem:[%s5064_s2 + $0x78] sm:$0xff]  }
  0xe0   : > { %v3294_v41 = vpop.f32.mrf.mxu0 }
  0xe1   : > { %v317_v42 = vadd.f32 %v3294_v41, %v233_v38  ;;  %3717 = vtanh.f32 %v306_v40  ;;  %v400_v40 = vld [vmem:[%s5063_s1 + $0x34] sm:$0x1] }
  0xe2   : > { %v308_v44 = vpop.f32.mrf.mxu0  ;;  %v401_v41 = vunpack.c.l.bf16 %v400_v40 }
  0xe3   : > { %v309_v45 = vadd.f32 %v308_v44, %v233_v38  ;;  %3719 = vtanh.f32 %v317_v42 }
  0xe4   : > { %v3297_v46 = vpop.f32.mrf.mxu0 }
  0xe5   : > { %3721 = vtanh.f32 %v309_v45  ;;  %v330_v51 = vadd.f32 %v3297_v46, %v233_v38 }
  0xe6   : > { %3723 = vtanh.f32 %v314_v43  ;;  %v321_v47 = vpop.f32.mrf.mxu0  ;;  %v4259_v43 = vrot.slane %v401_v41, %v4220_v36 }
  0xe7   : > { %v322_v48 = vadd.f32 %v321_v47, %v233_v38 }
  0xe8   : > { %v3298_v49 = vpop.f32.mrf.mxu0 }
  0xe9   : > { %v333_v50 = vadd.f32 %v3298_v49, %v233_v38  ;;  %3725 = vtanh.f32 %v322_v48 }
  0xea   : > { %v324_v52 = vpop.f32.mrf.mxu0 }
  0xeb   : > { %v325_v53 = vadd.f32 %v324_v52, %v233_v38  ;;  %3727 = vtanh.f32 %v333_v50 }
  0xec   : > { %v3301_v54 = vpop.f32.mrf.mxu0 }
  0xed   : > { %3729 = vtanh.f32 %v325_v53  ;;  %v346_v62 = vadd.f32 %v3301_v54, %v233_v38 }
  0xee   : > { %3731 = vtanh.f32 %v330_v51  ;;  %v337_v55 = vpop.f32.mrf.mxu0  ;;  %v3718_v57 = vpop.eup %3717 }
  0xef   : > { %v338_v56 = vadd.f32 %v337_v55, %v233_v38 }
  0xf0   : > { %v3302_v58 = vpop.f32.mrf.mxu0  ;;  %v3720_v59 = vpop.eup %3719 }
  0xf1   : > { %v349_v60 = vadd.f32 %v3302_v58, %v233_v38  ;;  %3733 = vtanh.f32 %v338_v56 }
  0xf2   : > { %v3722_v61 = vpop.eup %3721  ;;  %v340_v63 = vpop.f32.mrf.mxu0 }
  0xf3   : > { %v3724_v0 = vpop.eup %3723  ;;  %v341_v1 = vadd.f32 %v340_v63, %v233_v38  ;;  %v384_v2 = vpack.c.bf16 %v3722_v61, %v3718_v57  ;;  %3735 = vtanh.f32 %v349_v60 }
  0xf4   : > { %v3305_v3 = vpop.f32.mrf.mxu0  ;;  %v385_v4 = vpack.c.bf16 %v3720_v59, %v3724_v0 }
  0xf5   : > { %3737 = vtanh.f32 %v341_v1  ;;  %3315 = vmatprep.mubr.msk.bf16.mxu1 %vm430_vm1, %v384_v2  ;;  %v362_v12 = vadd.f32 %v3305_v3, %v233_v38 }
  0xf6   : > { %3739 = vtanh.f32 %v346_v62  ;;  %v353_v5 = vpop.f32.mrf.mxu0  ;;  %3316 = vmatmul.mubr.msk.bf16.vlgmr.msra.gmra.mxu1 %vm430_vm1, %v385_v4  ;;  %v3726_v7 = vpop.eup %3725 }
  0xf7   : > { %v354_v6 = vadd.f32 %v353_v5, %v233_v38  ;;  %3356 = vmatpush3.bf16.msra.mxu1 %v3670_v31  ;;  %v3672_v31 = vld [vmem:[%s5064_s2 + $0x30] sm:$0xff]  }
  0xf8   : > { %v3306_v8 = vpop.f32.mrf.mxu0  ;;  %v3728_v9 = vpop.eup %3727  ;;  %3357 = vmatprep.subr.bf16.mxu1 %v3672_v31 }
  0xf9   : > { %v365_v10 = vadd.f32 %v3306_v8, %v233_v38  ;;  %3741 = vtanh.f32 %v354_v6 }
  0xfa   : > { %v3730_v11 = vpop.eup %3729  ;;  %v356_v13 = vpop.f32.mrf.mxu0 }
  0xfb   : > { %v3732_v14 = vpop.eup %3731  ;;  %v357_v15 = vadd.f32 %v356_v13, %v233_v38  ;;  %v386_v16 = vpack.c.bf16 %v3730_v11, %v3726_v7  ;;  %3743 = vtanh.f32 %v365_v10  ;;  %3358 = vmatpush3.bf16.msra.mxu1 %v3672_v31  ;;  %v3677_v38 = vld [vmem:[%s5064_s2 + $0x58] sm:$0xff]   ;;  %v3679_v10 = vld [vmem:[%s5064_s2 + $0x50] sm:$0xff]  }
  0xfc   : > { %v387_v17 = vpack.c.bf16 %v3728_v9, %v3732_v14  ;;  %3359 = vmatprep.subr.bf16.mxu1 %v3674_v34  ;;  %3379 = vmatprep.subr.bf16.mxu0 %v3677_v38  ;;  %v3680_v11 = vld [vmem:[%s5064_s2 + $0x70] sm:$0xff]   ;;  %v3686_v31 = vld [vmem:[%s5064_s2 + $0xbc] sm:$0xff]  }
  0xfd   : > { %3745 = vtanh.f32 %v357_v15  ;;  %3319 = vmatprep.mubr.msk.bf16.mxu1 %vm430_vm1, %v386_v16  ;;  %v3681_v16 = vld [vmem:[%s5064_s2 + $0x48] sm:$0xff]  }
  0xfe   : > { %3747 = vtanh.f32 %v362_v12  ;;  %3320 = vmatmul.mubr.msk.bf16.gmra.mxu1 %vm430_vm1, %v387_v17  ;;  %v3734_v18 = vpop.eup %3733  ;;  %v3682_v17 = vld [vmem:[%s5064_s2 + $0x68] sm:$0xff]  }
  0xff   : > { %3360 = vmatpush3.bf16.msra.mxu1 %v3674_v34 }
 0x100   : > { %v3736_v19 = vpop.eup %3735  ;;  %3361 = vmatprep.subr.bf16.mxu1 %v3676_v37 }
 0x102   : > { %v3738_v20 = vpop.eup %3737 }
 0x103   : > { %v3740_v21 = vpop.eup %3739  ;;  %v388_v22 = vpack.c.bf16 %v3738_v20, %v3734_v18  ;;  %3362 = vmatpush3.bf16.msra.mxu1 %v3676_v37 }
 0x104   : > { %v389_v23 = vpack.c.bf16 %v3736_v19, %v3740_v21  ;;  %3403 = vmatprep.subr.bf16.mxu1 %v3678_v39 }
 0x105   : > { %3323 = vmatprep.mubr.msk.bf16.mxu1 %vm430_vm1, %v388_v22 }
 0x106   : > { %3324 = vmatmul.mubr.msk.bf16.gmra.mxu1 %vm430_vm1, %v389_v23  ;;  %v3742_v24 = vpop.eup %3741 }
 0x108   : > { %v3744_v25 = vpop.eup %3743 }
 0x10a   : > { %v3746_v26 = vpop.eup %3745 }
 0x10b   : > { %v3748_v27 = vpop.eup %3747  ;;  %v390_v28 = vpack.c.bf16 %v3746_v26, %v3742_v24 }
 0x10c   : > { %v391_v29 = vpack.c.bf16 %v3744_v25, %v3748_v27  ;;  %v3683_v27 = vld [vmem:[%s5064_s2 + $0x40] sm:$0xff]  }
 0x10d   : > { %3327 = vmatprep.mubr.msk.bf16.mxu1 %vm430_vm1, %v390_v28  ;;  %v3684_v28 = vld [vmem:[%s5064_s2 + $0x60] sm:$0xff]  }
 0x10e   : > { %3328 = vmatmul.mubr.msk.bf16.gmra.mxu1 %vm430_vm1, %v391_v29 }
 0x1b6   : > { %v3317_v42 = vpop.f32.mrf.mxu1 }
 0x1b7   : > { %v498_v48 = vadd.f32 %v3317_v42, %v4259_v43 }
 0x1b8   : > { %v489_v44 = vpop.f32.mrf.mxu1 }
 0x1b9   : > { %v490_v45 = vadd.f32 %v489_v44, %v4259_v43 }
 0x1ba   : > { %v3318_v46 = vpop.f32.mrf.mxu1 }
 0x1bb   : > { %v501_v47 = vadd.f32 %v3318_v46, %v4259_v43  ;;  %3749 = vtanh.f32 %v490_v45  ;;  %v3687_v45 = vld [vmem:[%s5064_s2 + $0x94] sm:$0xff]  }
 0x1bc   : > { %v492_v49 = vpop.f32.mrf.mxu1  ;;  %v3688_v46 = vld [vmem:[%s5064_s2 + $0xb4] sm:$0xff]  }
 0x1bd   : > { %v493_v50 = vadd.f32 %v492_v49, %v4259_v43  ;;  %3751 = vtanh.f32 %v501_v47  ;;  %v3689_v47 = vld [vmem:[%s5064_s2 + $0x8c] sm:$0xff]   ;;  %v3691_v49 = vld [vmem:[%s5064_s2 + $0x84] sm:$0xff]  }
 0x1be   : > { %v3321_v51 = vpop.f32.mrf.mxu1 }
 0x1bf   : > { %3753 = vtanh.f32 %v493_v50  ;;  %v514_v56 = vadd.f32 %v3321_v51, %v4259_v43  ;;  %v3692_v50 = vld [vmem:[%s5064_s2 + $0xa4] sm:$0xff]   ;;  %v4366_v51 = vld [vmem:[%s5064_s2 + $0xdc] sm:$0xff]  }
 0x1c0   : > { %3755 = vtanh.f32 %v498_v48  ;;  %v505_v52 = vpop.f32.mrf.mxu1  ;;  %v3690_v48 = vld [vmem:[%s5064_s2 + $0xac] sm:$0xff]  }
 0x1c1   : > { %v506_v53 = vadd.f32 %v505_v52, %v4259_v43  ;;  %v4372_v52 = vld [vmem:[%s5064_s2 + $0xfc] sm:$0xff]  }
 0x1c2   : > { %v3322_v54 = vpop.f32.mrf.mxu1 }
 0x1c3   : > { %v517_v55 = vadd.f32 %v3322_v54, %v4259_v43  ;;  %3757 = vtanh.f32 %v506_v53  ;;  %v584_v53 = vld [vmem:[%s5064_s2 + $0x80] sm:$0x1] }
 0x1c4   : > { %v508_v57 = vpop.f32.mrf.mxu1  ;;  %v585_v54 = vunpack.c.l.bf16 %v584_v53 }
 0x1c5   : > { %v509_v58 = vadd.f32 %v508_v57, %v4259_v43  ;;  %3759 = vtanh.f32 %v517_v55 }
 0x1c6   : > { %v3325_v59 = vpop.f32.mrf.mxu1  ;;  %v4379_v55 = vrot.slane %v585_v54, %v4220_v36 }
 0x1c7   : > { %3761 = vtanh.f32 %v509_v58  ;;  %v530_v3 = vadd.f32 %v3325_v59, %v4259_v43 }
 0x1c8   : > { %3763 = vtanh.f32 %v514_v56  ;;  %v521_v60 = vpop.f32.mrf.mxu1  ;;  %v3750_v62 = vpop.eup %3749  ;;  %v4382_v56 = vsub.s32 1, %v4214_v33 }
 0x1c9   : > { %v522_v61 = vadd.f32 %v521_v60, %v4259_v43 }
 0x1ca   : > { %v3326_v63 = vpop.f32.mrf.mxu1  ;;  %v3752_v0 = vpop.eup %3751  ;;  %v4386_v60 = vrot.slane %v585_v54, %v4382_v56 }
 0x1cb   : > { %v533_v1 = vadd.f32 %v3326_v63, %v4259_v43  ;;  %3765 = vtanh.f32 %v522_v61 }
 0x1cc   : > { %v3754_v2 = vpop.eup %3753  ;;  %v524_v4 = vpop.f32.mrf.mxu1 }
 0x1cd   : > { %v3756_v5 = vpop.eup %3755  ;;  %v525_v6 = vadd.f32 %v524_v4, %v4259_v43  ;;  %v4273_v7 = vpack.c.bf16 %v3754_v2, %v3750_v62  ;;  %3767 = vtanh.f32 %v533_v1 }
 0x1ce   : > { %v4275_v8 = vpack.c.bf16 %v3752_v0, %v3756_v5  ;;  %v3329_v9 = vpop.f32.mrf.mxu1 }
 0x1cf   : > { %3769 = vtanh.f32 %v525_v6  ;;  %3339 = vmatprep.mubr.msk.bf16.mxu0 %vm430_vm1, %v4273_v7  ;;  %3363 = vmatprep.mubr.msk.bf16.mxu1 %vm430_vm1, %v4273_v7  ;;  %v546_v21 = vadd.f32 %v3329_v9, %v4259_v43 }
 0x1d0   : > { %3771 = vtanh.f32 %v530_v3  ;;  %v537_v12 = vpop.f32.mrf.mxu1  ;;  %3340 = vmatmul.mubr.msk.bf16.vlgmr.msra.gmra.mxu0 %vm430_vm1, %v4275_v8  ;;  %3364 = vmatmul.mubr.msk.bf16.vlgmr.msra.gmra.mxu1 %vm430_vm1, %v4275_v8  ;;  %v3758_v14 = vpop.eup %3757 }
 0x1d1   : > { %v538_v13 = vadd.f32 %v537_v12, %v4259_v43  ;;  %3380 = vmatpush3.bf16.msra.mxu0 %v3677_v38  ;;  %3404 = vmatpush3.bf16.msra.mxu1 %v3678_v39 }
 0x1d2   : > { %v3330_v15 = vpop.f32.mrf.mxu1  ;;  %3381 = vmatprep.subr.bf16.mxu0 %v3679_v10  ;;  %3405 = vmatprep.subr.bf16.mxu1 %v3680_v11  ;;  %v3760_v18 = vpop.eup %3759 }
 0x1d3   : > { %v549_v19 = vadd.f32 %v3330_v15, %v4259_v43  ;;  %3773 = vtanh.f32 %v538_v13 }
 0x1d4   : > { %v3762_v20 = vpop.eup %3761  ;;  %v540_v22 = vpop.f32.mrf.mxu1 }
 0x1d5   : > { %v3764_v23 = vpop.eup %3763  ;;  %v541_v24 = vadd.f32 %v540_v22, %v4259_v43  ;;  %v570_v25 = vpack.c.bf16 %v3762_v20, %v3758_v14  ;;  %3382 = vmatpush3.bf16.msra.mxu0 %v3679_v10  ;;  %3406 = vmatpush3.bf16.msra.mxu1 %v3680_v11  ;;  %3775 = vtanh.f32 %v549_v19 }
 0x1d6   : > { %v571_v26 = vpack.c.bf16 %v3760_v18, %v3764_v23  ;;  %3383 = vmatprep.subr.bf16.mxu0 %v3681_v16  ;;  %3407 = vmatprep.subr.bf16.mxu1 %v3682_v17 }
 0x1d7   : > { %3777 = vtanh.f32 %v541_v24  ;;  %3343 = vmatprep.mubr.msk.bf16.mxu0 %vm430_vm1, %v570_v25  ;;  %3367 = vmatprep.mubr.msk.bf16.mxu1 %vm430_vm1, %v570_v25 }
 0x1d8   : > { %3779 = vtanh.f32 %v546_v21  ;;  %3344 = vmatmul.mubr.msk.bf16.gmra.mxu0 %vm430_vm1, %v571_v26  ;;  %3368 = vmatmul.mubr.msk.bf16.gmra.mxu1 %vm430_vm1, %v571_v26  ;;  %v3766_v29 = vpop.eup %3765 }
 0x1d9   : > { %3384 = vmatpush3.bf16.msra.mxu0 %v3681_v16  ;;  %3408 = vmatpush3.bf16.msra.mxu1 %v3682_v17 }
 0x1da   : > { %3385 = vmatprep.subr.bf16.mxu0 %v3683_v27  ;;  %3409 = vmatprep.subr.bf16.mxu1 %v3684_v28  ;;  %v3768_v32 = vpop.eup %3767 }
 0x1dc   : > { %v3770_v34 = vpop.eup %3769 }
 0x1dd   : > { %v3772_v35 = vpop.eup %3771  ;;  %v572_v37 = vpack.c.bf16 %v3770_v34, %v3766_v29  ;;  %3386 = vmatpush3.bf16.msra.mxu0 %v3683_v27  ;;  %3410 = vmatpush3.bf16.msra.mxu1 %v3684_v28 }
 0x1de   : > { %v573_v38 = vpack.c.bf16 %v3768_v32, %v3772_v35  ;;  %3427 = vmatprep.subr.bf16.mxu0 %v3685_v30  ;;  %3451 = vmatprep.subr.bf16.mxu1 %v3686_v31 }
 0x1df   : > { %3347 = vmatprep.mubr.msk.bf16.mxu0 %vm430_vm1, %v572_v37  ;;  %3371 = vmatprep.mubr.msk.bf16.mxu1 %vm430_vm1, %v572_v37 }
 0x1e0   : > { %3348 = vmatmul.mubr.msk.bf16.gmra.mxu0 %vm430_vm1, %v573_v38  ;;  %3372 = vmatmul.mubr.msk.bf16.gmra.mxu1 %vm430_vm1, %v573_v38  ;;  %v3774_v39 = vpop.eup %3773 }
 0x1e2   : > { %v3776_v40 = vpop.eup %3775 }
 0x1e4   : > { %v3778_v41 = vpop.eup %3777 }
 0x1e5   : > { %v3780_v42 = vpop.eup %3779  ;;  %v574_v43 = vpack.c.bf16 %v3778_v41, %v3774_v39 }
 0x1e6   : > { %v575_v44 = vpack.c.bf16 %v3776_v40, %v3780_v42 }
 0x1e7   : > { %3351 = vmatprep.mubr.msk.bf16.mxu0 %vm430_vm1, %v574_v43  ;;  %3375 = vmatprep.mubr.msk.bf16.mxu1 %vm430_vm1, %v574_v43 }
 0x1e8   : > { %3352 = vmatmul.mubr.msk.bf16.gmra.mxu0 %vm430_vm1, %v575_v44  ;;  %3376 = vmatmul.mubr.msk.bf16.gmra.mxu1 %vm430_vm1, %v575_v44 }
 0x1e9   : > { %3387 = vmatprep.mubr.msk.bf16.mxu0 %vm430_vm1, %v4273_v7  ;;  %3411 = vmatprep.mubr.msk.bf16.mxu1 %vm430_vm1, %v4273_v7 }
 0x1f0   : > { %3388 = vmatmul.mubr.msk.bf16.vlgmr.msra.gmra.mxu0 %vm430_vm1, %v4275_v8  ;;  %3412 = vmatmul.mubr.msk.bf16.vlgmr.msra.gmra.mxu1 %vm430_vm1, %v4275_v8 }
 0x1f1   : > { %3391 = vmatprep.mubr.msk.bf16.mxu0 %vm430_vm1, %v570_v25  ;;  %3415 = vmatprep.mubr.msk.bf16.mxu1 %vm430_vm1, %v570_v25 }
 0x1f2   : > { %3428 = vmatpush3.bf16.msra.mxu0 %v3685_v30  ;;  %3452 = vmatpush3.bf16.msra.mxu1 %v3686_v31 }
 0x1f3   : > { %3429 = vmatprep.subr.bf16.mxu0 %v3687_v45  ;;  %3453 = vmatprep.subr.bf16.mxu1 %v3688_v46 }
 0x1f6   : > { %3430 = vmatpush3.bf16.msra.mxu0 %v3687_v45  ;;  %3454 = vmatpush3.bf16.msra.mxu1 %v3688_v46 }
 0x1f7   : > { %3431 = vmatprep.subr.bf16.mxu0 %v3689_v47  ;;  %3455 = vmatprep.subr.bf16.mxu1 %v3690_v48 }
 0x1f8   : > { %3392 = vmatmul.mubr.msk.bf16.gmra.mxu0 %vm430_vm1, %v571_v26  ;;  %3416 = vmatmul.mubr.msk.bf16.gmra.mxu1 %vm430_vm1, %v571_v26 }
 0x1f9   : > { %3395 = vmatprep.mubr.msk.bf16.mxu0 %vm430_vm1, %v572_v37  ;;  %3419 = vmatprep.mubr.msk.bf16.mxu1 %vm430_vm1, %v572_v37 }
 0x1fa   : > { %3432 = vmatpush3.bf16.msra.mxu0 %v3689_v47  ;;  %3456 = vmatpush3.bf16.msra.mxu1 %v3690_v48 }
 0x1fb   : > { %3433 = vmatprep.subr.bf16.mxu0 %v3691_v49  ;;  %3457 = vmatprep.subr.bf16.mxu1 %v3692_v50 }
 0x1fe   : > { %3434 = vmatpush3.bf16.msra.mxu0 %v3691_v49  ;;  %3458 = vmatpush3.bf16.msra.mxu1 %v3692_v50 }
 0x1ff   : > { %3475 = vmatprep.subr.bf16.mxu0 %v4366_v51  ;;  %3499 = vmatprep.subr.bf16.mxu1 %v4372_v52 }
 0x200   : > { %3396 = vmatmul.mubr.msk.bf16.gmra.mxu0 %vm430_vm1, %v573_v38  ;;  %3420 = vmatmul.mubr.msk.bf16.gmra.mxu1 %vm430_vm1, %v573_v38 }
 0x201   : > { %3399 = vmatprep.mubr.msk.bf16.mxu0 %vm430_vm1, %v574_v43  ;;  %3423 = vmatprep.mubr.msk.bf16.mxu1 %vm430_vm1, %v574_v43 }
 0x208   : > { %3400 = vmatmul.mubr.msk.bf16.gmra.mxu0 %vm430_vm1, %v575_v44  ;;  %3424 = vmatmul.mubr.msk.bf16.gmra.mxu1 %vm430_vm1, %v575_v44  ;;  %v4411_v44 = vld [vmem:[%s5064_s2 + $0x80] sm:$0x2] }
 0x290   : > { %v3341_v57 = vpop.f32.mrf.mxu0  ;;  %v3365_v58 = vpop.f32.mrf.mxu1 }
 0x291   : > { %v681_v59 = vadd.f32 %v3341_v57, %v4379_v55  ;;  %v838_v7 = vadd.f32 %v3365_v58, %v4386_v60 }
 0x292   : > { %v672_v61 = vpop.f32.mrf.mxu0  ;;  %v829_v62 = vpop.f32.mrf.mxu1 }
 0x293   : > { %v673_v63 = vadd.f32 %v672_v61, %v4379_v55  ;;  %v830_v0 = vadd.f32 %v829_v62, %v4386_v60  ;;  %3781 = vtanh.f32 %v681_v59 }
 0x294   : > { %v3342_v1 = vpop.f32.mrf.mxu0  ;;  %v3366_v2 = vpop.f32.mrf.mxu1 }
 0x295   : > { %3783 = vtanh.f32 %v673_v63  ;;  %v684_v3 = vadd.f32 %v3342_v1, %v4379_v55  ;;  %v841_v4 = vadd.f32 %v3366_v2, %v4386_v60  ;;  %v925_v63 = vunpack.c.l.bf16 %v4411_v44 }
 0x296   : > { %3785 = vtanh.f32 %v830_v0  ;;  %v675_v5 = vpop.f32.mrf.mxu0  ;;  %v832_v6 = vpop.f32.mrf.mxu1  ;;  %v3695_v0 = vld [vmem:[%s5064_s2 + $0xd4] sm:$0xff]  }
 0x297   : > { %3787 = vtanh.f32 %v684_v3  ;;  %v676_v8 = vadd.f32 %v675_v5, %v4379_v55  ;;  %v833_v9 = vadd.f32 %v832_v6, %v4386_v60  ;;  %v3696_v5 = vld [vmem:[%s5064_s2 + $0xf4] sm:$0xff]  }
 0x298   : > { %3789 = vtanh.f32 %v841_v4  ;;  %v3345_v10 = vpop.f32.mrf.mxu0  ;;  %v3369_v11 = vpop.f32.mrf.mxu1  ;;  %v4425_v4 = vsub.s32 2, %v4214_v33 }
 0x299   : > { %3791 = vtanh.f32 %v676_v8  ;;  %v697_v12 = vadd.f32 %v3345_v10, %v4379_v55  ;;  %v854_v23 = vadd.f32 %v3369_v11, %v4386_v60 }
 0x29a   : > { %3793 = vtanh.f32 %v833_v9  ;;  %v688_v13 = vpop.f32.mrf.mxu0  ;;  %v845_v14 = vpop.f32.mrf.mxu1 }
 0x29b   : > { %3795 = vtanh.f32 %v838_v7  ;;  %v689_v15 = vadd.f32 %v688_v13, %v4379_v55  ;;  %v846_v16 = vadd.f32 %v845_v14, %v4386_v60 }
 0x29c   : > { %3797 = vtanh.f32 %v697_v12  ;;  %v3346_v17 = vpop.f32.mrf.mxu0  ;;  %v3370_v18 = vpop.f32.mrf.mxu1 }
 0x29d   : > { %3799 = vtanh.f32 %v689_v15  ;;  %v700_v19 = vadd.f32 %v3346_v17, %v4379_v55  ;;  %v857_v20 = vadd.f32 %v3370_v18, %v4386_v60  ;;  %v4438_v15 = vsub.s32 3, %v4214_v33  ;;  %v3698_v33 = vld [vmem:[%s5064_s2 + $0xec] sm:$0xff]  }
 0x29e   : > { %3801 = vtanh.f32 %v846_v16  ;;  %v691_v21 = vpop.f32.mrf.mxu0  ;;  %v848_v22 = vpop.f32.mrf.mxu1  ;;  %v3697_v16 = vld [vmem:[%s5064_s2 + $0xcc] sm:$0xff]  }
 0x29f   : > { %3803 = vtanh.f32 %v700_v19  ;;  %v692_v24 = vadd.f32 %v691_v21, %v4379_v55  ;;  %v849_v25 = vadd.f32 %v848_v22, %v4386_v60  ;;  %v4446_v19 = vrot.slane %v925_v63, %v4425_v4 }
 0x2a0   : > { %3805 = vtanh.f32 %v857_v20  ;;  %v3349_v26 = vpop.f32.mrf.mxu0  ;;  %v3373_v27 = vpop.f32.mrf.mxu1 }
 0x2a1   : > { %v3782_v28 = vpop.eup %3781  ;;  %3807 = vtanh.f32 %v692_v24  ;;  %v713_v29 = vadd.f32 %v3349_v26, %v4379_v55  ;;  %v870_v46 = vadd.f32 %v3373_v27, %v4386_v60 }
 0x2a2   : > { %v3784_v30 = vpop.eup %3783  ;;  %3809 = vtanh.f32 %v849_v25  ;;  %v704_v31 = vpop.f32.mrf.mxu0 }
 0x2a3   : > { %v861_v32 = vpop.f32.mrf.mxu1  ;;  %v3786_v34 = vpop.eup %3785  ;;  %3811 = vtanh.f32 %v854_v23  ;;  %v705_v35 = vadd.f32 %v704_v31, %v4379_v55 }
 0x2a4   : > { %v862_v37 = vadd.f32 %v861_v32, %v4386_v60  ;;  %v3788_v38 = vpop.eup %3787  ;;  %3813 = vtanh.f32 %v713_v29  ;;  %v3350_v39 = vpop.f32.mrf.mxu0  ;;  %v3699_v32 = vld [vmem:[%s5064_s2 + $0xc4] sm:$0xff]  }
 0x2a5   : > { %v3374_v40 = vpop.f32.mrf.mxu1  ;;  %v3790_v41 = vpop.eup %3789  ;;  %3815 = vtanh.f32 %v705_v35  ;;  %v716_v42 = vadd.f32 %v3350_v39, %v4379_v55  ;;  %v752_v58 = vpack.c.bf16 %v3788_v38, %v3782_v28 }
 0x2a6   : > { %v873_v43 = vadd.f32 %v3374_v40, %v4386_v60  ;;  %v3792_v45 = vpop.eup %3791  ;;  %3817 = vtanh.f32 %v862_v37  ;;  %v707_v47 = vpop.f32.mrf.mxu0  ;;  %v3700_v37 = vld [vmem:[%s5064_s2 + $0xe4] sm:$0xff]  }
 0x2a7   : > { %v864_v48 = vpop.f32.mrf.mxu1  ;;  %v3794_v49 = vpop.eup %3793  ;;  %3819 = vtanh.f32 %v716_v42  ;;  %v708_v50 = vadd.f32 %v707_v47, %v4379_v55  ;;  %v751_v54 = vpack.c.bf16 %v3792_v45, %v3784_v30  ;;  %v4476_v47 = vld [vmem:[%s5065_s3 + $0x18] sm:$0xff]  }
 0x2a8   : > { %v865_v53 = vadd.f32 %v864_v48, %v4386_v60  ;;  %v3796_v57 = vpop.eup %3795  ;;  %3821 = vtanh.f32 %v873_v43  ;;  %v3353_v59 = vpop.f32.mrf.mxu0  ;;  %v908_v62 = vpack.c.bf16 %v3794_v49, %v3786_v34 }
 0x2a9   : > { %v3377_v61 = vpop.f32.mrf.mxu1  ;;  %v4420_v1 = vpop.eup %3797  ;;  %v909_v2 = vpack.c.bf16 %v3790_v41, %v3796_v57  ;;  %3823 = vtanh.f32 %v708_v50  ;;  %v729_v3 = vadd.f32 %v3353_v59, %v4379_v55  ;;  %3435 = vmatprep.mubr.msk.bf16.mxu0 %vm430_vm1, %v751_v54 }
 0x2aa   : > { %v3800_v6 = vpop.eup %3799  ;;  %3825 = vtanh.f32 %v865_v53  ;;  %3459 = vmatprep.mubr.msk.bf16.mxu1 %vm430_vm1, %v908_v62  ;;  %v720_v7 = vpop.f32.mrf.mxu0  ;;  %3436 = vmatmul.mubr.msk.bf16.vlgmr.msra.gmra.mxu0 %vm430_vm1, %v752_v58  ;;  %v886_v20 = vadd.f32 %v3377_v61, %v4386_v60  ;;  %v4483_v53 = vld [vmem:[%s5065_s3 + $0x38] sm:$0xff]  }
 0x2ab   : > { %v877_v8 = vpop.f32.mrf.mxu1  ;;  %v3802_v9 = vpop.eup %3801  ;;  %3827 = vtanh.f32 %v870_v46  ;;  %v721_v10 = vadd.f32 %v720_v7, %v4379_v55  ;;  %3460 = vmatmul.mubr.msk.bf16.vlgmr.msra.gmra.mxu1 %vm430_vm1, %v909_v2  ;;  %3476 = vmatpush3.bf16.msra.mxu0 %v4366_v51 }
 0x2ac   : > { %v878_v11 = vadd.f32 %v877_v8, %v4386_v60  ;;  %v3804_v12 = vpop.eup %3803  ;;  %3829 = vtanh.f32 %v729_v3  ;;  %v3354_v13 = vpop.f32.mrf.mxu0  ;;  %3500 = vmatpush3.bf16.msra.mxu1 %v4372_v52  ;;  %3477 = vmatprep.subr.bf16.mxu0 %v3695_v0 }
 0x2ad   : > { %v3378_v14 = vpop.f32.mrf.mxu1  ;;  %v3806_v17 = vpop.eup %3805  ;;  %3831 = vtanh.f32 %v721_v10  ;;  %v732_v18 = vadd.f32 %v3354_v13, %v4379_v55  ;;  %3501 = vmatprep.subr.bf16.mxu1 %v3696_v5  ;;  %v754_v31 = vpack.c.bf16 %v3804_v12, %v4420_v1 }
 0x2ae   : > { %v889_v51 = vadd.f32 %v3378_v14, %v4386_v60  ;;  %v3808_v52 = vpop.eup %3807  ;;  %3833 = vtanh.f32 %v878_v11  ;;  %v723_v21 = vpop.f32.mrf.mxu0 }
 0x2af   : > { %v880_v22 = vpop.f32.mrf.mxu1  ;;  %v3810_v23 = vpop.eup %3809  ;;  %3835 = vtanh.f32 %v732_v18  ;;  %v724_v24 = vadd.f32 %v723_v21, %v4379_v55  ;;  %v753_v26 = vpack.c.bf16 %v3808_v52, %v3800_v6  ;;  %3478 = vmatpush3.bf16.msra.mxu0 %v3695_v0 }
 0x2b0   : > { %v881_v25 = vadd.f32 %v880_v22, %v4386_v60  ;;  %v3812_v27 = vpop.eup %3811  ;;  %3837 = vtanh.f32 %v889_v51  ;;  %v3389_v28 = vpop.f32.mrf.mxu0  ;;  %v910_v30 = vpack.c.bf16 %v3810_v23, %v3802_v9  ;;  %3502 = vmatpush3.bf16.msra.mxu1 %v3696_v5  ;;  %3479 = vmatprep.subr.bf16.mxu0 %v3697_v16  ;;  %v4462_v60 = vrot.slane %v925_v63, %v4438_v15 }
 0x2b1   : > { %v3413_v29 = vpop.f32.mrf.mxu1  ;;  %v4458_v34 = vpop.eup %3813  ;;  %3839 = vtanh.f32 %v724_v24  ;;  %v997_v55 = vadd.f32 %v3389_v28, %v4446_v19  ;;  %3439 = vmatprep.mubr.msk.bf16.mxu0 %vm430_vm1, %v753_v26  ;;  %v911_v35 = vpack.c.bf16 %v3806_v17, %v3812_v27  ;;  %3503 = vmatprep.subr.bf16.mxu1 %v3698_v33 }
 0x2b2   : > { %v3816_v38 = vpop.eup %3815  ;;  %3841 = vtanh.f32 %v881_v25  ;;  %3463 = vmatprep.mubr.msk.bf16.mxu1 %vm430_vm1, %v910_v30  ;;  %v988_v39 = vpop.f32.mrf.mxu0  ;;  %3440 = vmatmul.mubr.msk.bf16.gmra.mxu0 %vm430_vm1, %v754_v31  ;;  %v1154_v57 = vadd.f32 %v3413_v29, %v4462_v60 }
 0x2b3   : > { %v1145_v40 = vpop.f32.mrf.mxu1  ;;  %v3818_v41 = vpop.eup %3817  ;;  %3843 = vtanh.f32 %v886_v20  ;;  %v989_v42 = vadd.f32 %v988_v39, %v4446_v19  ;;  %3464 = vmatmul.mubr.msk.bf16.gmra.mxu1 %vm430_vm1, %v911_v35  ;;  %3480 = vmatpush3.bf16.msra.mxu0 %v3697_v16 }
 0x2b4   : > { %v1146_v43 = vadd.f32 %v1145_v40, %v4462_v60  ;;  %v3820_v44 = vpop.eup %3819  ;;  %3845 = vtanh.f32 %v997_v55  ;;  %v3390_v45 = vpop.f32.mrf.mxu0  ;;  %3504 = vmatpush3.bf16.msra.mxu1 %v3698_v33  ;;  %3481 = vmatprep.subr.bf16.mxu0 %v3699_v32 }
 0x2b5   : > { %v3414_v46 = vpop.f32.mrf.mxu1  ;;  %v3822_v48 = vpop.eup %3821  ;;  %3847 = vtanh.f32 %v989_v42  ;;  %v1000_v49 = vadd.f32 %v3390_v45, %v4446_v19  ;;  %3505 = vmatprep.subr.bf16.mxu1 %v3700_v37  ;;  %v756_v6 = vpack.c.bf16 %v3820_v44, %v4458_v34 }
 0x2b6   : > { %v1157_v50 = vadd.f32 %v3414_v46, %v4462_v60  ;;  %v3824_v54 = vpop.eup %3823  ;;  %3849 = vtanh.f32 %v1146_v43  ;;  %v991_v58 = vpop.f32.mrf.mxu0 }
 0x2b7   : > { %v1148_v59 = vpop.f32.mrf.mxu1  ;;  %v3826_v61 = vpop.eup %3825  ;;  %3851 = vtanh.f32 %v1000_v49  ;;  %v992_v62 = vadd.f32 %v991_v58, %v4446_v19  ;;  %v755_v0 = vpack.c.bf16 %v3824_v54, %v3816_v38  ;;  %3482 = vmatpush3.bf16.msra.mxu0 %v3699_v32 }
 0x2b8   : > { %v1149_v63 = vadd.f32 %v1148_v59, %v4462_v60  ;;  %v3828_v1 = vpop.eup %3827  ;;  %3853 = vtanh.f32 %v1157_v50  ;;  %v3393_v2 = vpop.f32.mrf.mxu0  ;;  %v912_v5 = vpack.c.bf16 %v3826_v61, %v3818_v41  ;;  %3506 = vmatpush3.bf16.msra.mxu1 %v3700_v37  ;;  %3523 = vmatprep.subr.bf16.mxu0 %v4476_v47 }
 0x2b9   : > { %v3417_v3 = vpop.f32.mrf.mxu1  ;;  %v3830_v7 = vpop.eup %3829  ;;  %3855 = vtanh.f32 %v992_v62  ;;  %v1013_v8 = vadd.f32 %v3393_v2, %v4446_v19  ;;  %3443 = vmatprep.mubr.msk.bf16.mxu0 %vm430_vm1, %v755_v0  ;;  %v913_v9 = vpack.c.bf16 %v3822_v48, %v3828_v1  ;;  %3547 = vmatprep.subr.bf16.mxu1 %v4483_v53 }
 0x2ba   : > { %v3832_v10 = vpop.eup %3831  ;;  %3857 = vtanh.f32 %v1149_v63  ;;  %3467 = vmatprep.mubr.msk.bf16.mxu1 %vm430_vm1, %v912_v5  ;;  %v1004_v11 = vpop.f32.mrf.mxu0  ;;  %3444 = vmatmul.mubr.msk.bf16.gmra.mxu0 %vm430_vm1, %v756_v6  ;;  %v1170_v22 = vadd.f32 %v3417_v3, %v4462_v60 }
 0x2bb   : > { %v1161_v12 = vpop.f32.mrf.mxu1  ;;  %v3834_v13 = vpop.eup %3833  ;;  %3859 = vtanh.f32 %v1154_v57  ;;  %v1005_v14 = vadd.f32 %v1004_v11, %v4446_v19  ;;  %3468 = vmatmul.mubr.msk.bf16.gmra.mxu1 %vm430_vm1, %v913_v9 }
 0x2bc   : > { %v1162_v16 = vadd.f32 %v1161_v12, %v4462_v60  ;;  %v3836_v17 = vpop.eup %3835  ;;  %3861 = vtanh.f32 %v1013_v8  ;;  %v3394_v18 = vpop.f32.mrf.mxu0 }
 0x2bd   : > { %v3418_v51 = vpop.f32.mrf.mxu1  ;;  %v3838_v33 = vpop.eup %3837  ;;  %3863 = vtanh.f32 %v1005_v14  ;;  %v1016_v52 = vadd.f32 %v3394_v18, %v4446_v19  ;;  %v758_v34 = vpack.c.bf16 %v3836_v17, %v3830_v7 }
 0x2be   : > { %v1173_v20 = vadd.f32 %v3418_v51, %v4462_v60  ;;  %v3840_v21 = vpop.eup %3839  ;;  %3865 = vtanh.f32 %v1162_v16  ;;  %v1007_v23 = vpop.f32.mrf.mxu0 }
 0x2bf   : > { %v1164_v24 = vpop.f32.mrf.mxu1  ;;  %v3842_v25 = vpop.eup %3841  ;;  %3867 = vtanh.f32 %v1016_v52  ;;  %v1008_v26 = vadd.f32 %v1007_v23, %v4446_v19  ;;  %v757_v28 = vpack.c.bf16 %v3840_v21, %v3832_v10 }
 0x2c0   : > { %v1165_v27 = vadd.f32 %v1164_v24, %v4462_v60  ;;  %v3844_v29 = vpop.eup %3843  ;;  %3869 = vtanh.f32 %v1173_v20  ;;  %v3397_v30 = vpop.f32.mrf.mxu0  ;;  %v914_v32 = vpack.c.bf16 %v3842_v25, %v3834_v13 }
 0x2c1   : > { %v3421_v31 = vpop.f32.mrf.mxu1  ;;  %v3846_v55 = vpop.eup %3845  ;;  %3871 = vtanh.f32 %v1008_v26  ;;  %v1029_v35 = vadd.f32 %v3397_v30, %v4446_v19  ;;  %3447 = vmatprep.mubr.msk.bf16.mxu0 %vm430_vm1, %v757_v28  ;;  %v915_v37 = vpack.c.bf16 %v3838_v33, %v3844_v29 }
 0x2c2   : > { %v3848_v38 = vpop.eup %3847  ;;  %3873 = vtanh.f32 %v1165_v27  ;;  %3471 = vmatprep.mubr.msk.bf16.mxu1 %vm430_vm1, %v914_v32  ;;  %v1020_v39 = vpop.f32.mrf.mxu0  ;;  %3448 = vmatmul.mubr.msk.bf16.gmra.mxu0 %vm430_vm1, %v758_v34  ;;  %v1186_v57 = vadd.f32 %v3421_v31, %v4462_v60 }
 0x2c3   : > { %v1177_v40 = vpop.f32.mrf.mxu1  ;;  %v3850_v41 = vpop.eup %3849  ;;  %3875 = vtanh.f32 %v1170_v22  ;;  %v1021_v42 = vadd.f32 %v1020_v39, %v4446_v19  ;;  %3472 = vmatmul.mubr.msk.bf16.gmra.mxu1 %vm430_vm1, %v915_v37 }
 0x2c4   : > { %v1178_v43 = vadd.f32 %v1177_v40, %v4462_v60  ;;  %v3852_v44 = vpop.eup %3851  ;;  %3877 = vtanh.f32 %v1029_v35  ;;  %v3398_v45 = vpop.f32.mrf.mxu0 }
 0x2c5   : > { %v3422_v46 = vpop.f32.mrf.mxu1  ;;  %v3854_v48 = vpop.eup %3853  ;;  %3879 = vtanh.f32 %v1021_v42  ;;  %v1032_v49 = vadd.f32 %v3398_v45, %v4446_v19  ;;  %v1068_v2 = vpack.c.bf16 %v3852_v44, %v3846_v55 }
 0x2c6   : > { %v1189_v50 = vadd.f32 %v3422_v46, %v4462_v60  ;;  %v3856_v54 = vpop.eup %3855  ;;  %3881 = vtanh.f32 %v1178_v43  ;;  %v1023_v58 = vpop.f32.mrf.mxu0 }
 0x2c7   : > { %v1180_v59 = vpop.f32.mrf.mxu1  ;;  %v3858_v61 = vpop.eup %3857  ;;  %3883 = vtanh.f32 %v1032_v49  ;;  %v1024_v62 = vadd.f32 %v1023_v58, %v4446_v19  ;;  %v1067_v0 = vpack.c.bf16 %v3856_v54, %v3848_v38 }
 0x2c8   : > { %v1181_v63 = vadd.f32 %v1180_v59, %v4462_v60  ;;  %v3860_v1 = vpop.eup %3859  ;;  %3885 = vtanh.f32 %v1189_v50  ;;  %v3401_v3 = vpop.f32.mrf.mxu0  ;;  %v1224_v6 = vpack.c.bf16 %v3858_v61, %v3850_v41  ;;  %v3703_v61 = vld [vmem:[%s5065_s3 + $0x10] sm:$0xff]  }
 0x2c9   : > { %v3425_v5 = vpop.f32.mrf.mxu1  ;;  %v3862_v7 = vpop.eup %3861  ;;  %v1225_v8 = vpack.c.bf16 %v3854_v48, %v3860_v1  ;;  %3887 = vtanh.f32 %v1024_v62  ;;  %v1045_v9 = vadd.f32 %v3401_v3, %v4446_v19  ;;  %3483 = vmatprep.mubr.msk.bf16.mxu0 %vm430_vm1, %v1067_v0  ;;  %v3704_v62 = vld [vmem:[%s5065_s3 + $0x30] sm:$0xff]   ;;  %v3706_v0 = vld [vmem:[%s5065_s3 + $0x28] sm:$0xff]   ;;  %v3707_v1 = vld [vmem:[%s5065_s3] sm:$0xff]  }
 0x2ca   : > { %v3864_v10 = vpop.eup %3863  ;;  %3889 = vtanh.f32 %v1181_v63  ;;  %3507 = vmatprep.mubr.msk.bf16.mxu1 %vm430_vm1, %v1224_v6  ;;  %v1036_v11 = vpop.f32.mrf.mxu0  ;;  %3484 = vmatmul.mubr.msk.bf16.vlgmr.msra.gmra.mxu0 %vm430_vm1, %v1068_v2  ;;  %v1202_v22 = vadd.f32 %v3425_v5, %v4462_v60  ;;  %v3705_v63 = vld [vmem:[%s5065_s3 + $0x8] sm:$0xff]   ;;  %v3708_v2 = vld [vmem:[%s5065_s3 + $0x20] sm:$0xff]   ;;  %v4562_v3 = vld [vmem:[%s5065_s3 + $0x58] sm:$0xff]  }
 0x2cb   : > { %v1193_v12 = vpop.f32.mrf.mxu1  ;;  %v3866_v13 = vpop.eup %3865  ;;  %3891 = vtanh.f32 %v1186_v57  ;;  %v1037_v14 = vadd.f32 %v1036_v11, %v4446_v19  ;;  %3508 = vmatmul.mubr.msk.bf16.vlgmr.msra.gmra.mxu1 %vm430_vm1, %v1225_v8  ;;  %3524 = vmatpush3.bf16.msra.mxu0 %v4476_v47  ;;  %v4568_v5 = vld [vmem:[%s5065_s3 + $0x78] sm:$0xff]   ;;  %v1240_v6 = vld [vmem:[%s5064_s2 + $0x104] sm:$0x1] }
 0x2cc   : > { %v1194_v16 = vadd.f32 %v1193_v12, %v4462_v60  ;;  %v3868_v17 = vpop.eup %3867  ;;  %3893 = vtanh.f32 %v1045_v9  ;;  %v3402_v18 = vpop.f32.mrf.mxu0  ;;  %3548 = vmatpush3.bf16.msra.mxu1 %v4483_v53  ;;  %3525 = vmatprep.subr.bf16.mxu0 %v3703_v61 }
 0x2cd   : > { %v3426_v51 = vpop.f32.mrf.mxu1  ;;  %v3870_v33 = vpop.eup %3869  ;;  %3895 = vtanh.f32 %v1037_v14  ;;  %v1048_v52 = vadd.f32 %v3402_v18, %v4446_v19  ;;  %v1070_v29 = vpack.c.bf16 %v3868_v17, %v3862_v7  ;;  %3549 = vmatprep.subr.bf16.mxu1 %v3704_v62  ;;  %v1241_v7 = vunpack.c.l.bf16 %v1240_v6 }
 0x2ce   : > { %v1205_v20 = vadd.f32 %v3426_v51, %v4462_v60  ;;  %v3872_v21 = vpop.eup %3871  ;;  %3897 = vtanh.f32 %v1194_v16  ;;  %v1039_v23 = vpop.f32.mrf.mxu0 }
 0x2cf   : > { %v1196_v24 = vpop.f32.mrf.mxu1  ;;  %v3874_v25 = vpop.eup %3873  ;;  %3899 = vtanh.f32 %v1048_v52  ;;  %v1040_v47 = vadd.f32 %v1039_v23, %v4446_v19  ;;  %v1069_v27 = vpack.c.bf16 %v3872_v21, %v3864_v10  ;;  %3526 = vmatpush3.bf16.msra.mxu0 %v3703_v61  ;;  %v4575_v8 = vrot.slane %v1241_v7, %v4220_v36 }
 0x2d0   : > { %v1197_v26 = vadd.f32 %v1196_v24, %v4462_v60  ;;  %v3876_v53 = vpop.eup %3875  ;;  %3901 = vtanh.f32 %v1205_v20  ;;  %v1226_v28 = vpack.c.bf16 %v3874_v25, %v3866_v13  ;;  %3550 = vmatpush3.bf16.msra.mxu1 %v3704_v62  ;;  %3527 = vmatprep.subr.bf16.mxu0 %v3705_v63  ;;  %v4579_v12 = vrot.slane %v1241_v7, %v4382_v56 }
 0x2d1   : > { %v3878_v30 = vpop.eup %3877  ;;  %3903 = vtanh.f32 %v1040_v47  ;;  %3487 = vmatprep.mubr.msk.bf16.mxu0 %vm430_vm1, %v1069_v27  ;;  %v1227_v31 = vpack.c.bf16 %v3870_v33, %v3876_v53  ;;  %3551 = vmatprep.subr.bf16.mxu1 %v3706_v0 }
 0x2d2   : > { %v3880_v32 = vpop.eup %3879  ;;  %3905 = vtanh.f32 %v1197_v26  ;;  %3511 = vmatprep.mubr.msk.bf16.mxu1 %vm430_vm1, %v1226_v28  ;;  %3488 = vmatmul.mubr.msk.bf16.gmra.mxu0 %vm430_vm1, %v1070_v29 }
 0x2d3   : > { %v3882_v34 = vpop.eup %3881  ;;  %3907 = vtanh.f32 %v1202_v22  ;;  %3512 = vmatmul.mubr.msk.bf16.gmra.mxu1 %vm430_vm1, %v1227_v31  ;;  %3528 = vmatpush3.bf16.msra.mxu0 %v3705_v63  ;;  %v4604_v63 = vld [vmem:[%s5064_s2 + $0x104] sm:$0x2] }
 0x2d4   : > { %v3884_v19 = vpop.eup %3883  ;;  %3552 = vmatpush3.bf16.msra.mxu1 %v3706_v0  ;;  %3529 = vmatprep.subr.bf16.mxu0 %v3707_v1 }
 0x2d5   : > { %v3886_v60 = vpop.eup %3885  ;;  %v1072_v40 = vpack.c.bf16 %v3884_v19, %v3878_v30  ;;  %3553 = vmatprep.subr.bf16.mxu1 %v3708_v2 }
 0x2d6   : > { %v3888_v55 = vpop.eup %3887 }
 0x2d7   : > { %v3890_v35 = vpop.eup %3889  ;;  %v1071_v37 = vpack.c.bf16 %v3888_v55, %v3880_v32  ;;  %3530 = vmatpush3.bf16.msra.mxu0 %v3707_v1 }
 0x2d8   : > { %v3892_v38 = vpop.eup %3891  ;;  %v1228_v39 = vpack.c.bf16 %v3890_v35, %v3882_v34  ;;  %3554 = vmatpush3.bf16.msra.mxu1 %v3708_v2  ;;  %3571 = vmatprep.subr.bf16.mxu0 %v4562_v3 }
 0x2d9   : > { %v3894_v41 = vpop.eup %3893  ;;  %3491 = vmatprep.mubr.msk.bf16.mxu0 %vm430_vm1, %v1071_v37  ;;  %v1229_v42 = vpack.c.bf16 %v3886_v60, %v3892_v38  ;;  %3595 = vmatprep.subr.bf16.mxu1 %v4568_v5 }
 0x2da   : > { %v3896_v43 = vpop.eup %3895  ;;  %3515 = vmatprep.mubr.msk.bf16.mxu1 %vm430_vm1, %v1228_v39  ;;  %3492 = vmatmul.mubr.msk.bf16.gmra.mxu0 %vm430_vm1, %v1072_v40 }
 0x2db   : > { %v3898_v44 = vpop.eup %3897  ;;  %3516 = vmatmul.mubr.msk.bf16.gmra.mxu1 %vm430_vm1, %v1229_v42 }
 0x2dc   : > { %v3900_v45 = vpop.eup %3899 }
 0x2dd   : > { %v3902_v46 = vpop.eup %3901  ;;  %v1074_v58 = vpack.c.bf16 %v3900_v45, %v3894_v41 }
 0x2de   : > { %v3904_v48 = vpop.eup %3903 }
 0x2df   : > { %v3906_v49 = vpop.eup %3905  ;;  %v1073_v50 = vpack.c.bf16 %v3904_v48, %v3896_v43 }
 0x2e0   : > { %v3908_v54 = vpop.eup %3907  ;;  %v1230_v57 = vpack.c.bf16 %v3906_v49, %v3898_v44 }
 0x2e1   : > { %3495 = vmatprep.mubr.msk.bf16.mxu0 %vm430_vm1, %v1073_v50  ;;  %v1231_v59 = vpack.c.bf16 %v3902_v46, %v3908_v54 }
 0x2e2   : > { %3519 = vmatprep.mubr.msk.bf16.mxu1 %vm430_vm1, %v1230_v57  ;;  %3496 = vmatmul.mubr.msk.bf16.gmra.mxu0 %vm430_vm1, %v1074_v58 }
 0x2e3   : > { %3520 = vmatmul.mubr.msk.bf16.gmra.mxu1 %vm430_vm1, %v1231_v59 }
 0x36a   : > { %v3437_v9 = vpop.f32.mrf.mxu0 }
 0x36b   : > { %v1337_v10 = vadd.f32 %v3437_v9, %v4575_v8  ;;  %v3461_v11 = vpop.f32.mrf.mxu1 }
 0x36c   : > { %v1328_v13 = vpop.f32.mrf.mxu0  ;;  %v1518_v21 = vadd.f32 %v3461_v11, %v4579_v12 }
 0x36d   : > { %v1329_v14 = vadd.f32 %v1328_v13, %v4575_v8  ;;  %v1509_v16 = vpop.f32.mrf.mxu1  ;;  %3909 = vtanh.f32 %v1337_v10 }
 0x36e   : > { %v1510_v17 = vadd.f32 %v1509_v16, %v4579_v12  ;;  %v3438_v18 = vpop.f32.mrf.mxu0  ;;  %v3711_v16 = vld [vmem:[%s5065_s3 + $0x50] sm:$0xff]  }
 0x36f   : > { %3911 = vtanh.f32 %v1329_v14  ;;  %v1340_v51 = vadd.f32 %v3438_v18, %v4575_v8  ;;  %v3462_v33 = vpop.f32.mrf.mxu1 }
 0x370   : > { %3913 = vtanh.f32 %v1510_v17  ;;  %v1521_v52 = vadd.f32 %v3462_v33, %v4579_v12  ;;  %v1331_v20 = vpop.f32.mrf.mxu0 }
 0x371   : > { %3915 = vtanh.f32 %v1340_v51  ;;  %v1332_v22 = vadd.f32 %v1331_v20, %v4575_v8  ;;  %v1512_v23 = vpop.f32.mrf.mxu1  ;;  %v3712_v20 = vld [vmem:[%s5065_s3 + $0x70] sm:$0xff]  }
 0x372   : > { %3917 = vtanh.f32 %v1521_v52  ;;  %v1513_v24 = vadd.f32 %v1512_v23, %v4579_v12  ;;  %v3441_v25 = vpop.f32.mrf.mxu0  ;;  %v1605_v52 = vunpack.c.l.bf16 %v4604_v63 }
 0x373   : > { %3919 = vtanh.f32 %v1332_v22  ;;  %v1353_v47 = vadd.f32 %v3441_v25, %v4575_v8  ;;  %v3465_v26 = vpop.f32.mrf.mxu1 }
 0x374   : > { %3921 = vtanh.f32 %v1513_v24  ;;  %v1344_v27 = vpop.f32.mrf.mxu0  ;;  %v1534_v60 = vadd.f32 %v3465_v26, %v4579_v12 }
 0x375   : > { %3923 = vtanh.f32 %v1518_v21  ;;  %v1345_v53 = vadd.f32 %v1344_v27, %v4575_v8  ;;  %v1525_v28 = vpop.f32.mrf.mxu1 }
 0x376   : > { %3925 = vtanh.f32 %v1353_v47  ;;  %v1526_v29 = vadd.f32 %v1525_v28, %v4579_v12  ;;  %v3442_v30 = vpop.f32.mrf.mxu0 }
 0x377   : > { %3927 = vtanh.f32 %v1345_v53  ;;  %v1356_v31 = vadd.f32 %v3442_v30, %v4575_v8  ;;  %v3466_v32 = vpop.f32.mrf.mxu1  ;;  %v3713_v53 = vld [vmem:[%s5065_s3 + $0x48] sm:$0xff]  }
 0x378   : > { %3929 = vtanh.f32 %v1526_v29  ;;  %v1537_v34 = vadd.f32 %v3466_v32, %v4579_v12  ;;  %v1347_v19 = vpop.f32.mrf.mxu0 }
 0x379   : > { %3931 = vtanh.f32 %v1356_v31  ;;  %v1348_v55 = vadd.f32 %v1347_v19, %v4575_v8  ;;  %v1528_v35 = vpop.f32.mrf.mxu1  ;;  %v4632_v31 = vrot.slane %v1605_v52, %v4425_v4 }
 0x37a   : > { %3933 = vtanh.f32 %v1537_v34  ;;  %v1529_v37 = vadd.f32 %v1528_v35, %v4579_v12  ;;  %v3445_v38 = vpop.f32.mrf.mxu0  ;;  %v3910_v39 = vpop.eup %3909 }
 0x37b   : > { %3935 = vtanh.f32 %v1348_v55  ;;  %v1369_v40 = vadd.f32 %v3445_v38, %v4575_v8  ;;  %v3469_v41 = vpop.f32.mrf.mxu1 }
 0x37c   : > { %v3912_v42 = vpop.eup %3911  ;;  %3937 = vtanh.f32 %v1529_v37  ;;  %v1360_v43 = vpop.f32.mrf.mxu0  ;;  %v1550_v1 = vadd.f32 %v3469_v41, %v4579_v12 }
 0x37d   : > { %v3914_v44 = vpop.eup %3913  ;;  %3939 = vtanh.f32 %v1534_v60  ;;  %v1361_v45 = vadd.f32 %v1360_v43, %v4575_v8  ;;  %v1541_v46 = vpop.f32.mrf.mxu1  ;;  %v3715_v43 = vld [vmem:[%s5065_s3 + $0x40] sm:$0xff]  }
 0x37e   : > { %v3916_v48 = vpop.eup %3915  ;;  %3941 = vtanh.f32 %v1369_v40  ;;  %v1542_v49 = vadd.f32 %v1541_v46, %v4579_v12  ;;  %v3446_v50 = vpop.f32.mrf.mxu0 }
 0x37f   : > { %v3918_v54 = vpop.eup %3917  ;;  %3943 = vtanh.f32 %v1361_v45  ;;  %v1372_v57 = vadd.f32 %v3446_v50, %v4575_v8  ;;  %v3470_v58 = vpop.f32.mrf.mxu1  ;;  %v1408_v10 = vpack.c.bf16 %v3916_v48, %v3910_v39 }
 0x380   : > { %v3920_v59 = vpop.eup %3919  ;;  %3945 = vtanh.f32 %v1542_v49  ;;  %v1553_v61 = vadd.f32 %v3470_v58, %v4579_v12  ;;  %v1363_v62 = vpop.f32.mrf.mxu0  ;;  %v4651_v49 = vrot.slane %v1605_v52, %v4438_v15 }
 0x381   : > { %v3922_v0 = vpop.eup %3921  ;;  %3947 = vtanh.f32 %v1372_v57  ;;  %v1364_v2 = vadd.f32 %v1363_v62, %v4575_v8  ;;  %v1544_v6 = vpop.f32.mrf.mxu1  ;;  %v1407_v7 = vpack.c.bf16 %v3920_v59, %v3912_v42 }
 0x382   : > { %v3924_v9 = vpop.eup %3923  ;;  %3949 = vtanh.f32 %v1553_v61  ;;  %v1545_v11 = vadd.f32 %v1544_v6, %v4579_v12  ;;  %v3449_v13 = vpop.f32.mrf.mxu0  ;;  %v1588_v14 = vpack.c.bf16 %v3922_v0, %v3914_v44 }
 0x383   : > { %v4612_v17 = vpop.eup %3925  ;;  %v1589_v18 = vpack.c.bf16 %v3918_v54, %v3924_v9  ;;  %3951 = vtanh.f32 %v1364_v2  ;;  %v1385_v51 = vadd.f32 %v3449_v13, %v4575_v8  ;;  %v3473_v33 = vpop.f32.mrf.mxu1  ;;  %3531 = vmatprep.mubr.msk.bf16.mxu0 %vm430_vm1, %v1407_v7 }
 0x384   : > { %v3928_v21 = vpop.eup %3927  ;;  %3953 = vtanh.f32 %v1545_v11  ;;  %3555 = vmatprep.mubr.msk.bf16.mxu1 %vm430_vm1, %v1588_v14  ;;  %v1376_v22 = vpop.f32.mrf.mxu0  ;;  %3532 = vmatmul.mubr.msk.bf16.vlgmr.msra.gmra.mxu0 %vm430_vm1, %v1408_v10  ;;  %v1566_v60 = vadd.f32 %v3473_v33, %v4579_v12 }
 0x385   : > { %v3930_v23 = vpop.eup %3929  ;;  %3955 = vtanh.f32 %v1550_v1  ;;  %v1377_v24 = vadd.f32 %v1376_v22, %v4575_v8  ;;  %v1557_v25 = vpop.f32.mrf.mxu1  ;;  %3556 = vmatmul.mubr.msk.bf16.vlgmr.msra.gmra.mxu1 %vm430_vm1, %v1589_v18  ;;  %3572 = vmatpush3.bf16.msra.mxu0 %v4562_v3  ;;  %v3714_v3 = vld [vmem:[%s5065_s3 + $0x68] sm:$0xff]  }
 0x386   : > { %v3932_v47 = vpop.eup %3931  ;;  %3957 = vtanh.f32 %v1385_v51  ;;  %v1558_v26 = vadd.f32 %v1557_v25, %v4579_v12  ;;  %v3450_v27 = vpop.f32.mrf.mxu0  ;;  %3596 = vmatpush3.bf16.msra.mxu1 %v4568_v5  ;;  %3573 = vmatprep.subr.bf16.mxu0 %v3711_v16 }
 0x387   : > { %v3934_v28 = vpop.eup %3933  ;;  %3959 = vtanh.f32 %v1377_v24  ;;  %v1388_v29 = vadd.f32 %v3450_v27, %v4575_v8  ;;  %v3474_v30 = vpop.f32.mrf.mxu1  ;;  %3597 = vmatprep.subr.bf16.mxu1 %v3712_v20  ;;  %v1410_v42 = vpack.c.bf16 %v3932_v47, %v4612_v17 }
 0x388   : > { %v3936_v32 = vpop.eup %3935  ;;  %3961 = vtanh.f32 %v1558_v26  ;;  %v1569_v5 = vadd.f32 %v3474_v30, %v4579_v12  ;;  %v1379_v34 = vpop.f32.mrf.mxu0 }
 0x389   : > { %v3938_v19 = vpop.eup %3937  ;;  %3963 = vtanh.f32 %v1388_v29  ;;  %v1380_v55 = vadd.f32 %v1379_v34, %v4575_v8  ;;  %v1560_v35 = vpop.f32.mrf.mxu1  ;;  %v1409_v37 = vpack.c.bf16 %v3936_v32, %v3928_v21  ;;  %3574 = vmatpush3.bf16.msra.mxu0 %v3711_v16 }
 0x38a   : > { %v3940_v38 = vpop.eup %3939  ;;  %3965 = vtanh.f32 %v1569_v5  ;;  %v1561_v39 = vadd.f32 %v1560_v35, %v4579_v12  ;;  %v3485_v40 = vpop.f32.mrf.mxu0  ;;  %v1590_v41 = vpack.c.bf16 %v3938_v19, %v3930_v23  ;;  %3598 = vmatpush3.bf16.msra.mxu1 %v3712_v20  ;;  %3575 = vmatprep.subr.bf16.mxu0 %v3713_v53  ;;  %v3716_v12 = vld [vmem:[%s5065_s3 + $0x60] sm:$0xff]  }
 0x38b   : > { %v3942_v44 = vpop.eup %3941  ;;  %3967 = vtanh.f32 %v1380_v55  ;;  %v1701_v8 = vadd.f32 %v3485_v40, %v4632_v31  ;;  %v3509_v45 = vpop.f32.mrf.mxu1  ;;  %3535 = vmatprep.mubr.msk.bf16.mxu0 %vm430_vm1, %v1409_v37  ;;  %v1591_v46 = vpack.c.bf16 %v3934_v28, %v3940_v38  ;;  %3599 = vmatprep.subr.bf16.mxu1 %v3714_v3 }
 0x38c   : > { %v3944_v48 = vpop.eup %3943  ;;  %3969 = vtanh.f32 %v1561_v39  ;;  %3559 = vmatprep.mubr.msk.bf16.mxu1 %vm430_vm1, %v1590_v41  ;;  %v1692_v50 = vpop.f32.mrf.mxu0  ;;  %3536 = vmatmul.mubr.msk.bf16.gmra.mxu0 %vm430_vm1, %v1410_v42  ;;  %v1882_v10 = vadd.f32 %v3509_v45, %v4651_v49 }
 0x38d   : > { %v3946_v54 = vpop.eup %3945  ;;  %3971 = vtanh.f32 %v1566_v60  ;;  %v1693_v57 = vadd.f32 %v1692_v50, %v4632_v31  ;;  %v1873_v58 = vpop.f32.mrf.mxu1  ;;  %3560 = vmatmul.mubr.msk.bf16.gmra.mxu1 %vm430_vm1, %v1591_v46  ;;  %3576 = vmatpush3.bf16.msra.mxu0 %v3713_v53 }
 0x38e   : > { %v3948_v59 = vpop.eup %3947  ;;  %3973 = vtanh.f32 %v1701_v8  ;;  %v1874_v61 = vadd.f32 %v1873_v58, %v4651_v49  ;;  %v3486_v62 = vpop.f32.mrf.mxu0  ;;  %3600 = vmatpush3.bf16.msra.mxu1 %v3714_v3  ;;  %3577 = vmatprep.subr.bf16.mxu0 %v3715_v43 }
 0x38f   : > { %v3950_v63 = vpop.eup %3949  ;;  %3975 = vtanh.f32 %v1693_v57  ;;  %v1704_v0 = vadd.f32 %v3486_v62, %v4632_v31  ;;  %v3510_v1 = vpop.f32.mrf.mxu1  ;;  %3601 = vmatprep.subr.bf16.mxu1 %v3716_v12  ;;  %v1412_v33 = vpack.c.bf16 %v3948_v59, %v3942_v44 }
 0x390   : > { %v3952_v2 = vpop.eup %3951  ;;  %3977 = vtanh.f32 %v1874_v61  ;;  %v1885_v6 = vadd.f32 %v3510_v1, %v4651_v49  ;;  %v1695_v7 = vpop.f32.mrf.mxu0 }
 0x391   : > { %v3954_v9 = vpop.eup %3953  ;;  %3979 = vtanh.f32 %v1704_v0  ;;  %v1696_v11 = vadd.f32 %v1695_v7, %v4632_v31  ;;  %v1876_v13 = vpop.f32.mrf.mxu1  ;;  %v1411_v14 = vpack.c.bf16 %v3952_v2, %v3944_v48  ;;  %3578 = vmatpush3.bf16.msra.mxu0 %v3715_v43 }
 0x392   : > { %v3956_v16 = vpop.eup %3955  ;;  %3981 = vtanh.f32 %v1885_v6  ;;  %v1877_v17 = vadd.f32 %v1876_v13, %v4651_v49  ;;  %v3489_v18 = vpop.f32.mrf.mxu0  ;;  %v1592_v51 = vpack.c.bf16 %v3954_v9, %v3946_v54  ;;  %3602 = vmatpush3.bf16.msra.mxu1 %v3716_v12 }
 0x393   : > { %v3958_v52 = vpop.eup %3957  ;;  %3983 = vtanh.f32 %v1696_v11  ;;  %v1717_v20 = vadd.f32 %v3489_v18, %v4632_v31  ;;  %v3513_v21 = vpop.f32.mrf.mxu1  ;;  %3539 = vmatprep.mubr.msk.bf16.mxu0 %vm430_vm1, %v1411_v14  ;;  %v1593_v22 = vpack.c.bf16 %v3950_v63, %v3956_v16 }
 0x394   : > { %v3960_v23 = vpop.eup %3959  ;;  %3985 = vtanh.f32 %v1877_v17  ;;  %3563 = vmatprep.mubr.msk.bf16.mxu1 %vm430_vm1, %v1592_v51  ;;  %v1708_v24 = vpop.f32.mrf.mxu0  ;;  %3540 = vmatmul.mubr.msk.bf16.gmra.mxu0 %vm430_vm1, %v1412_v33  ;;  %v1898_v60 = vadd.f32 %v3513_v21, %v4651_v49 }
 0x395   : > { %v3962_v25 = vpop.eup %3961  ;;  %3987 = vtanh.f32 %v1882_v10  ;;  %v1709_v47 = vadd.f32 %v1708_v24, %v4632_v31  ;;  %v1889_v26 = vpop.f32.mrf.mxu1  ;;  %3564 = vmatmul.mubr.msk.bf16.gmra.mxu1 %vm430_vm1, %v1593_v22 }
 0x396   : > { %v3964_v27 = vpop.eup %3963  ;;  %3989 = vtanh.f32 %v1717_v20  ;;  %v1890_v53 = vadd.f32 %v1889_v26, %v4651_v49  ;;  %v3490_v28 = vpop.f32.mrf.mxu0 }
 0x397   : > { %v3966_v29 = vpop.eup %3965  ;;  %3991 = vtanh.f32 %v1709_v47  ;;  %v1720_v30 = vadd.f32 %v3490_v28, %v4632_v31  ;;  %v3514_v3 = vpop.f32.mrf.mxu1  ;;  %v1414_v42 = vpack.c.bf16 %v3964_v27, %v3958_v52 }
 0x398   : > { %v3968_v32 = vpop.eup %3967  ;;  %3993 = vtanh.f32 %v1890_v53  ;;  %v1901_v5 = vadd.f32 %v3514_v3, %v4651_v49  ;;  %v1711_v34 = vpop.f32.mrf.mxu0 }
 0x399   : > { %v3970_v19 = vpop.eup %3969  ;;  %3995 = vtanh.f32 %v1720_v30  ;;  %v1712_v55 = vadd.f32 %v1711_v34, %v4632_v31  ;;  %v1892_v35 = vpop.f32.mrf.mxu1  ;;  %v1413_v37 = vpack.c.bf16 %v3968_v32, %v3960_v23 }
 0x39a   : > { %v3972_v38 = vpop.eup %3971  ;;  %3997 = vtanh.f32 %v1901_v5  ;;  %v1893_v39 = vadd.f32 %v1892_v35, %v4651_v49  ;;  %v3493_v40 = vpop.f32.mrf.mxu0  ;;  %v1594_v41 = vpack.c.bf16 %v3970_v19, %v3962_v25 }
 0x39b   : > { %v3974_v43 = vpop.eup %3973  ;;  %3999 = vtanh.f32 %v1712_v55  ;;  %v1733_v44 = vadd.f32 %v3493_v40, %v4632_v31  ;;  %v3517_v8 = vpop.f32.mrf.mxu1  ;;  %3543 = vmatprep.mubr.msk.bf16.mxu0 %vm430_vm1, %v1413_v37  ;;  %v1595_v45 = vpack.c.bf16 %v3966_v29, %v3972_v38 }
 0x39c   : > { %v3976_v46 = vpop.eup %3975  ;;  %4001 = vtanh.f32 %v1893_v39  ;;  %3567 = vmatprep.mubr.msk.bf16.mxu1 %vm430_vm1, %v1594_v41  ;;  %v1724_v12 = vpop.f32.mrf.mxu0  ;;  %3544 = vmatmul.mubr.msk.bf16.gmra.mxu0 %vm430_vm1, %v1414_v42  ;;  %v1914_v7 = vadd.f32 %v3517_v8, %v4651_v49 }
 0x39d   : > { %v3978_v48 = vpop.eup %3977  ;;  %4003 = vtanh.f32 %v1898_v60  ;;  %v1725_v50 = vadd.f32 %v1724_v12, %v4632_v31  ;;  %v1905_v54 = vpop.f32.mrf.mxu1  ;;  %3568 = vmatmul.mubr.msk.bf16.gmra.mxu1 %vm430_vm1, %v1595_v45 }
 0x39e   : > { %v3980_v57 = vpop.eup %3979  ;;  %4005 = vtanh.f32 %v1733_v44  ;;  %v1906_v58 = vadd.f32 %v1905_v54, %v4651_v49  ;;  %v3494_v59 = vpop.f32.mrf.mxu0 }
 0x39f   : > { %v3982_v61 = vpop.eup %3981  ;;  %4007 = vtanh.f32 %v1725_v50  ;;  %v1736_v62 = vadd.f32 %v3494_v59, %v4632_v31  ;;  %v3518_v63 = vpop.f32.mrf.mxu1  ;;  %v1772_v14 = vpack.c.bf16 %v3980_v57, %v3974_v43 }
 0x3a0   : > { %v3984_v0 = vpop.eup %3983  ;;  %4009 = vtanh.f32 %v1906_v58  ;;  %v1917_v1 = vadd.f32 %v3518_v63, %v4651_v49  ;;  %v1727_v2 = vpop.f32.mrf.mxu0 }
 0x3a1   : > { %v3986_v6 = vpop.eup %3985  ;;  %4011 = vtanh.f32 %v1736_v62  ;;  %v1728_v9 = vadd.f32 %v1727_v2, %v4632_v31  ;;  %v1908_v10 = vpop.f32.mrf.mxu1  ;;  %v1771_v11 = vpack.c.bf16 %v3984_v0, %v3976_v46 }
 0x3a2   : > { %v3988_v13 = vpop.eup %3987  ;;  %4013 = vtanh.f32 %v1917_v1  ;;  %v1909_v16 = vadd.f32 %v1908_v10, %v4651_v49  ;;  %v3497_v17 = vpop.f32.mrf.mxu0  ;;  %v1952_v18 = vpack.c.bf16 %v3986_v6, %v3978_v48 }
 0x3a3   : > { %v3990_v51 = vpop.eup %3989  ;;  %v1953_v33 = vpack.c.bf16 %v3982_v61, %v3988_v13  ;;  %4015 = vtanh.f32 %v1728_v9  ;;  %v1749_v52 = vadd.f32 %v3497_v17, %v4632_v31  ;;  %v3521_v20 = vpop.f32.mrf.mxu1  ;;  %3579 = vmatprep.mubr.msk.bf16.mxu0 %vm430_vm1, %v1771_v11  ;;  %v4714_v9 = vld [vmem:[%s5065_s3 + $0x80] sm:$0x1] }
 0x3a4   : > { %v3992_v21 = vpop.eup %3991  ;;  %4017 = vtanh.f32 %v1909_v16  ;;  %3603 = vmatprep.mubr.msk.bf16.mxu1 %vm430_vm1, %v1952_v18  ;;  %v1740_v22 = vpop.f32.mrf.mxu0  ;;  %3580 = vmatmul.mubr.msk.bf16.vlgmr.msra.gmra.mxu0 %vm430_vm1, %v1772_v14  ;;  %v1930_v34 = vadd.f32 %v3521_v20, %v4651_v49  ;;  %v1969_v10 = vunpack.c.l.bf16 %v4714_v9 }
 0x3a5   : > { %v3994_v23 = vpop.eup %3993  ;;  %4019 = vtanh.f32 %v1914_v7  ;;  %v1741_v24 = vadd.f32 %v1740_v22, %v4632_v31  ;;  %v1921_v25 = vpop.f32.mrf.mxu1  ;;  %3604 = vmatmul.mubr.msk.bf16.vlgmr.msra.gmra.mxu1 %vm430_vm1, %v1953_v33 }
 0x3a6   : > { %v3996_v47 = vpop.eup %3995  ;;  %4021 = vtanh.f32 %v1749_v52  ;;  %v1922_v26 = vadd.f32 %v1921_v25, %v4651_v49  ;;  %v3498_v27 = vpop.f32.mrf.mxu0  ;;  %v4720_v11 = vrot.slane %v1969_v10, %v4382_v56 }
 0x3a7   : > { %v3998_v53 = vpop.eup %3997  ;;  %4023 = vtanh.f32 %v1741_v24  ;;  %v1752_v28 = vadd.f32 %v3498_v27, %v4632_v31  ;;  %v3522_v29 = vpop.f32.mrf.mxu1  ;;  %v1774_v39 = vpack.c.bf16 %v3996_v47, %v3990_v51 }
 0x3a8   : > { %v4000_v30 = vpop.eup %3999  ;;  %4025 = vtanh.f32 %v1922_v26  ;;  %v1933_v3 = vadd.f32 %v3522_v29, %v4651_v49  ;;  %v1743_v32 = vpop.f32.mrf.mxu0 }
 0x3a9   : > { %v4002_v5 = vpop.eup %4001  ;;  %4027 = vtanh.f32 %v1752_v28  ;;  %v1744_v19 = vadd.f32 %v1743_v32, %v4632_v31  ;;  %v1924_v60 = vpop.f32.mrf.mxu1  ;;  %v1773_v55 = vpack.c.bf16 %v4000_v30, %v3992_v21 }
 0x3aa   : > { %v4004_v35 = vpop.eup %4003  ;;  %4029 = vtanh.f32 %v1933_v3  ;;  %v1925_v37 = vadd.f32 %v1924_v60, %v4651_v49  ;;  %v1954_v38 = vpack.c.bf16 %v4002_v5, %v3994_v23 }
 0x3ab   : > { %v4006_v40 = vpop.eup %4005  ;;  %4031 = vtanh.f32 %v1744_v19  ;;  %3583 = vmatprep.mubr.msk.bf16.mxu0 %vm430_vm1, %v1773_v55  ;;  %v1955_v41 = vpack.c.bf16 %v3998_v53, %v4004_v35 }
 0x3ac   : > { %v4008_v42 = vpop.eup %4007  ;;  %4033 = vtanh.f32 %v1925_v37  ;;  %3607 = vmatprep.mubr.msk.bf16.mxu1 %vm430_vm1, %v1954_v38  ;;  %3584 = vmatmul.mubr.msk.bf16.gmra.mxu0 %vm430_vm1, %v1774_v39 }
 0x3ad   : > { %v4010_v31 = vpop.eup %4009  ;;  %4035 = vtanh.f32 %v1930_v34  ;;  %3608 = vmatmul.mubr.msk.bf16.gmra.mxu1 %vm430_vm1, %v1955_v41 }
 0x3ae   : > { %v4012_v43 = vpop.eup %4011 }
 0x3af   : > { %v4014_v44 = vpop.eup %4013  ;;  %v1776_v48 = vpack.c.bf16 %v4012_v43, %v4006_v40  ;;  %v2284_v43 = vld [vmem:[%s5065_s3 + $0x80] sm:$0x2] }
 0x3b0   : > { %v4016_v49 = vpop.eup %4015 }
 0x3b1   : > { %v4018_v8 = vpop.eup %4017  ;;  %v1775_v45 = vpack.c.bf16 %v4016_v49, %v4008_v42 }
 0x3b2   : > { %v4020_v46 = vpop.eup %4019  ;;  %v1956_v12 = vpack.c.bf16 %v4018_v8, %v4010_v31 }
 0x3b3   : > { %v4022_v50 = vpop.eup %4021  ;;  %3587 = vmatprep.mubr.msk.bf16.mxu0 %vm430_vm1, %v1775_v45  ;;  %v1957_v54 = vpack.c.bf16 %v4014_v44, %v4020_v46 }
 0x3b4   : > { %v4024_v57 = vpop.eup %4023  ;;  %3611 = vmatprep.mubr.msk.bf16.mxu1 %vm430_vm1, %v1956_v12  ;;  %3588 = vmatmul.mubr.msk.bf16.gmra.mxu0 %vm430_vm1, %v1776_v48  ;;  %v2285_v12 = vunpack.c.l.bf16 %v2284_v43 }
 0x3b5   : > { %v4026_v58 = vpop.eup %4025  ;;  %3612 = vmatmul.mubr.msk.bf16.gmra.mxu1 %vm430_vm1, %v1957_v54 }
 0x3b6   : > { %v4028_v59 = vpop.eup %4027 }
 0x3b7   : > { %v4030_v61 = vpop.eup %4029  ;;  %v1778_v6 = vpack.c.bf16 %v4028_v59, %v4022_v50  ;;  %v4787_v59 = vrot.slane %v2285_v12, %v4425_v4 }
 0x3b8   : > { %v4032_v62 = vpop.eup %4031 }
 0x3b9   : > { %v4034_v63 = vpop.eup %4033  ;;  %v1777_v0 = vpack.c.bf16 %v4032_v62, %v4024_v57 }
 0x3ba   : > { %v4036_v1 = vpop.eup %4035  ;;  %v1958_v2 = vpack.c.bf16 %v4034_v63, %v4026_v58 }
 0x3bb   : > { %3591 = vmatprep.mubr.msk.bf16.mxu0 %vm430_vm1, %v1777_v0  ;;  %v1959_v7 = vpack.c.bf16 %v4030_v61, %v4036_v1 }
 0x3bc   : > { %3615 = vmatprep.mubr.msk.bf16.mxu1 %vm430_vm1, %v1958_v2  ;;  %3592 = vmatmul.mubr.msk.bf16.gmra.mxu0 %vm430_vm1, %v1778_v6  ;;  %v4793_v6 = vrot.slane %v2285_v12, %v4438_v15 }
 0x3bd   : > { %3616 = vmatmul.mubr.msk.bf16.gmra.mxu1 %vm430_vm1, %v1959_v7 }
 0x444   : > { %v4722_v13 = vpop.f32.mrf.mxu0 }
 0x445   : > { %v3557_v14 = vpop.f32.mrf.mxu1 }
 0x446   : > { %v2222_v16 = vadd.f32 %v3557_v14, %v4720_v11  ;;  %v4725_v17 = vpop.f32.mrf.mxu0 }
 0x447   : > { %v2213_v18 = vpop.f32.mrf.mxu1 }
 0x448   : > { %v2214_v51 = vadd.f32 %v2213_v18, %v4720_v11  ;;  %2612 = vrot.lane.b32.xlu1 %v2222_v16, %s4099_s9  ;;  %v4729_v33 = vpop.f32.mrf.mxu0 }
 0x449   : > { %v3558_v52 = vpop.f32.mrf.mxu1 }
 0x44a   : > { %v2225_v20 = vadd.f32 %v3558_v52, %v4720_v11  ;;  %2608 = vrot.lane.b32.xlu0 %v2214_v51, %s4099_s9  ;;  %v4733_v56 = vpop.f32.mrf.mxu0 }
 0x44b   : > { %v2216_v21 = vpop.f32.mrf.mxu1 }
 0x44c   : > { %v2217_v22 = vadd.f32 %v2216_v21, %v4720_v11  ;;  %2614 = vrot.lane.b32.xlu1 %v2225_v20, %s4099_s9  ;;  %v4737_v23 = vpop.f32.mrf.mxu0 }
 0x44d   : > { %v3561_v24 = vpop.f32.mrf.mxu1 }
 0x44e   : > { %2610 = vrot.lane.b32.xlu0 %v2217_v22, %s4099_s9  ;;  %v4740_v25 = vpop.f32.mrf.mxu0  ;;  %v2238_v26 = vadd.f32 %v3561_v24, %v4720_v11 }
 0x44f   : > { %v2229_v47 = vpop.f32.mrf.mxu1 }
 0x450   : > { %v4743_v27 = vpop.f32.mrf.mxu0  ;;  %v2230_v3 = vadd.f32 %v2229_v47, %v4720_v11 }
 0x451   : > { %v3562_v53 = vpop.f32.mrf.mxu1 }
 0x452   : > { %v2241_v28 = vadd.f32 %v3562_v53, %v4720_v11  ;;  %2620 = vrot.lane.b32.xlu0 %v2238_v26, %s4099_s9  ;;  %v4747_v29 = vpop.f32.mrf.mxu0 }
 0x453   : > { %v2232_v30 = vpop.f32.mrf.mxu1 }
 0x454   : > { %2622 = vrot.lane.b32.xlu1 %v2241_v28, %s4099_s9  ;;  %v4751_v32 = vpop.f32.mrf.mxu0  ;;  %v2233_v34 = vadd.f32 %v2232_v30, %v4720_v11 }
 0x455   : > { %v3565_v5 = vpop.f32.mrf.mxu1 }
 0x456   : > { %2616 = vrot.lane.b32.xlu0 %v2230_v3, %s4099_s9  ;;  %v4755_v19 = vpop.f32.mrf.mxu0  ;;  %v2254_v55 = vadd.f32 %v3565_v5, %v4720_v11 }
 0x457   : > { %v2245_v60 = vpop.f32.mrf.mxu1 }
 0x458   : > { %2618 = vrot.lane.b32.xlu1 %v2233_v34, %s4099_s9  ;;  %v4759_v35 = vpop.f32.mrf.mxu0  ;;  %v2246_v41 = vadd.f32 %v2245_v60, %v4720_v11 }
 0x459   : > { %v3566_v37 = vpop.f32.mrf.mxu1 }
 0x45a   : > { %v2257_v38 = vadd.f32 %v3566_v37, %v4720_v11  ;;  %2628 = vrot.lane.b32.xlu0 %v2254_v55, %s4099_s9  ;;  %v4763_v39 = vpop.f32.mrf.mxu0 }
 0x45b   : > { %v2248_v40 = vpop.f32.mrf.mxu1 }
 0x45c   : > { %2630 = vrot.lane.b32.xlu1 %v2257_v38, %s4099_s9  ;;  %v4767_v42 = vpop.f32.mrf.mxu0  ;;  %v2249_v44 = vadd.f32 %v2248_v40, %v4720_v11 }
 0x45d   : > { %v3569_v31 = vpop.f32.mrf.mxu1 }
 0x45e   : > { %2624 = vrot.lane.b32.xlu0 %v2246_v41, %s4099_s9  ;;  %v4774_v49 = vpop.f32.mrf.mxu0  ;;  %v2270_v45 = vadd.f32 %v3569_v31, %v4720_v11 }
 0x45f   : > { %v2261_v8 = vpop.f32.mrf.mxu1 }
 0x460   : > { %2626 = vrot.lane.b32.xlu1 %v2249_v44, %s4099_s9  ;;  %v4778_v46 = vpop.f32.mrf.mxu0  ;;  %v2262_v58 = vadd.f32 %v2261_v8, %v4720_v11 }
 0x461   : > { %v3570_v48 = vpop.f32.mrf.mxu1 }
 0x462   : > { %v2273_v50 = vadd.f32 %v3570_v48, %v4720_v11  ;;  %2636 = vrot.lane.b32.xlu0 %v2270_v45, %s4099_s9  ;;  %v4782_v54 = vpop.f32.mrf.mxu0 }
 0x463   : > { %v2264_v57 = vpop.f32.mrf.mxu1 }
 0x464   : > { %2638 = vrot.lane.b32.xlu1 %v2273_v50, %s4099_s9  ;;  %v3581_v61 = vpop.f32.mrf.mxu0  ;;  %v2265_v63 = vadd.f32 %v2264_v57, %v4720_v11 }
 0x465   : > { %v3605_v62 = vpop.f32.mrf.mxu1  ;;  %v2381_v2 = vadd.f32 %v3581_v61, %v4787_v59 }
 0x466   : > { %2632 = vrot.lane.b32.xlu0 %v2262_v58, %s4099_s9  ;;  %v2372_v0 = vpop.f32.mrf.mxu0  ;;  %v2538_v11 = vadd.f32 %v3605_v62, %v4793_v6 }
 0x467   : > { %v2529_v1 = vpop.f32.mrf.mxu1  ;;  %v2373_v52 = vadd.f32 %v2372_v0, %v4787_v59 }
 0x468   : > { %2634 = vrot.lane.b32.xlu1 %v2265_v63, %s4099_s9  ;;  %v3582_v7 = vpop.f32.mrf.mxu0  ;;  %v2530_v24 = vadd.f32 %v2529_v1, %v4793_v6 }
 0x469   : > { %v2384_v14 = vadd.f32 %v3582_v7, %v4787_v59  ;;  %v3606_v4 = vpop.f32.mrf.mxu1 }
 0x46a   : > { %2676 = vrot.lane.b32.xlu0 %v2381_v2, %s4100_s12  ;;  %v2375_v16 = vpop.f32.mrf.mxu0  ;;  %v2541_v18 = vadd.f32 %v3606_v4, %v4793_v6 }
 0x46b   : > { %v2532_v15 = vpop.f32.mrf.mxu1  ;;  %v2376_v20 = vadd.f32 %v2375_v16, %v4787_v59 }
 0x46c   : > { %2678 = vrot.lane.b32.xlu1 %v2384_v14, %s4100_s12  ;;  %v3585_v51 = vpop.f32.mrf.mxu0  ;;  %v2533_v47 = vadd.f32 %v2532_v15, %v4793_v6 }
 0x46d   : > { %v3609_v21 = vpop.f32.mrf.mxu1  ;;  %v2397_v28 = vadd.f32 %v3585_v51, %v4787_v59 }
 0x46e   : > { %2740 = vrot.lane.b32.xlu0 %v2538_v11, %s4101_s13  ;;  %v2388_v22 = vpop.f32.mrf.mxu0  ;;  %v2554_v34 = vadd.f32 %v3609_v21, %v4793_v6 }
 0x46f   : > { %v2545_v26 = vpop.f32.mrf.mxu1  ;;  %v2389_v38 = vadd.f32 %v2388_v22, %v4787_v59 }
 0x470   : > { %2742 = vrot.lane.b32.xlu1 %v2541_v18, %s4101_s13  ;;  %v3586_v53 = vpop.f32.mrf.mxu0  ;;  %v2546_v43 = vadd.f32 %v2545_v26, %v4793_v6 }
 0x471   : > { %v2400_v30 = vadd.f32 %v3586_v53, %v4787_v59  ;;  %v3610_v3 = vpop.f32.mrf.mxu1 }
 0x472   : > { %2672 = vrot.lane.b32.xlu0 %v2373_v52, %s4100_s12  ;;  %v2391_v5 = vpop.f32.mrf.mxu0  ;;  %v2557_v60 = vadd.f32 %v3610_v3, %v4793_v6 }
 0x473   : > { %v2548_v55 = vpop.f32.mrf.mxu1  ;;  %v2392_v40 = vadd.f32 %v2391_v5, %v4787_v59 }
 0x474   : > { %2674 = vrot.lane.b32.xlu1 %v2376_v20, %s4100_s12  ;;  %v3589_v37 = vpop.f32.mrf.mxu0  ;;  %v2549_v44 = vadd.f32 %v2548_v55, %v4793_v6 }
 0x475   : > { %v3613_v41 = vpop.f32.mrf.mxu1  ;;  %v2413_v12 = vadd.f32 %v3589_v37, %v4787_v59 }
 0x476   : > { %2736 = vrot.lane.b32.xlu0 %v2530_v24, %s4101_s13  ;;  %v2404_v31 = vpop.f32.mrf.mxu0  ;;  %v2570_v58 = vadd.f32 %v3613_v41, %v4793_v6 }
 0x477   : > { %v2561_v8 = vpop.f32.mrf.mxu1  ;;  %v2405_v0 = vadd.f32 %v2404_v31, %v4787_v59 }
 0x478   : > { %2738 = vrot.lane.b32.xlu1 %v2533_v47, %s4101_s13  ;;  %v3590_v45 = vpop.f32.mrf.mxu0  ;;  %v2562_v14 = vadd.f32 %v2561_v8, %v4793_v6 }
 0x479   : > { %v2416_v48 = vadd.f32 %v3590_v45, %v4787_v59  ;;  %v3614_v50 = vpop.f32.mrf.mxu1 }
 0x47a   : > { %2684 = vrot.lane.b32.xlu0 %v2397_v28, %s4100_s12  ;;  %v2407_v57 = vpop.f32.mrf.mxu0  ;;  %v2573_v61 = vadd.f32 %v3614_v50, %v4793_v6 }
 0x47b   : > { %v2564_v62 = vpop.f32.mrf.mxu1  ;;  %v2408_v1 = vadd.f32 %v2407_v57, %v4787_v59 }
 0x47c   : > { %2686 = vrot.lane.b32.xlu1 %v2400_v30, %s4100_s12  ;;  %v3593_v63 = vpop.f32.mrf.mxu0  ;;  %v2565_v4 = vadd.f32 %v2564_v62, %v4793_v6 }
 0x47d   : > { %v3617_v2 = vpop.f32.mrf.mxu1  ;;  %v2429_v18 = vadd.f32 %v3593_v63, %v4787_v59 }
 0x47e   : > { %2748 = vrot.lane.b32.xlu0 %v2554_v34, %s4101_s13  ;;  %v2420_v7 = vpop.f32.mrf.mxu0  ;;  %v2586_v26 = vadd.f32 %v3617_v2, %v4793_v6 }
 0x47f   : > { %v2577_v16 = vpop.f32.mrf.mxu1  ;;  %v2421_v20 = vadd.f32 %v2420_v7, %v4787_v59 }
 0x480   : > { %2750 = vrot.lane.b32.xlu1 %v2557_v60, %s4101_s13  ;;  %v3594_v11 = vpop.f32.mrf.mxu0  ;;  %v2578_v24 = vadd.f32 %v2577_v16, %v4793_v6 }
 0x481   : > { %v2432_v15 = vadd.f32 %v3594_v11, %v4787_v59  ;;  %v3618_v51 = vpop.f32.mrf.mxu1 }
 0x482   : > { %2680 = vrot.lane.b32.xlu0 %v2389_v38, %s4100_s12  ;;  %v2423_v52 = vpop.f32.mrf.mxu0  ;;  %v2589_v53 = vadd.f32 %v3618_v51, %v4793_v6 }
 0x483   : > { %v2424_v21 = vadd.f32 %v2423_v52, %v4787_v59  ;;  %v2580_v22 = vpop.f32.mrf.mxu1 }
 0x484   : > { %2682 = vrot.lane.b32.xlu1 %v2392_v40, %s4100_s12  ;;  %v2581_v47 = vadd.f32 %v2580_v22, %v4793_v6  ;;  %v4872_v40 = vrot.slane %v1969_v10, %v4220_v36 }
 0x486   : > { %2744 = vrot.lane.b32.xlu0 %v2546_v43, %s4101_s13  ;;  %v2113_v31 = vadd.f32 %v4767_v42, %v4872_v40  ;;  %v2065_v42 = vadd.f32 %v4722_v13, %v4872_v40  ;;  %v2057_v7 = vadd.f32 %v4725_v17, %v4872_v40 }
 0x488   : > { %2746 = vrot.lane.b32.xlu1 %v2549_v44, %s4101_s13  ;;  %v2116_v44 = vadd.f32 %v4778_v46, %v4872_v40  ;;  %v2068_v46 = vadd.f32 %v4729_v33, %v4872_v40 }
 0x48a   : > { %2692 = vrot.lane.b32.xlu0 %v2413_v12, %s4100_s12 }
 0x48c   : > { %2694 = vrot.lane.b32.xlu1 %v2416_v48, %s4100_s12 }
 0x48e   : > { %2756 = vrot.lane.b32.xlu0 %v2570_v58, %s4101_s13 }
 0x490   : > { %2758 = vrot.lane.b32.xlu1 %v2573_v61, %s4101_s13 }
 0x492   : > { %2688 = vrot.lane.b32.xlu0 %v2405_v0, %s4100_s12 }
 0x494   : > { %2690 = vrot.lane.b32.xlu1 %v2408_v1, %s4100_s12 }
 0x496   : > { %2752 = vrot.lane.b32.xlu0 %v2562_v14, %s4101_s13 }
 0x498   : > { %2754 = vrot.lane.b32.xlu1 %v2565_v4, %s4101_s13  ;;  %v2060_v4 = vadd.f32 %v4733_v56, %v4872_v40 }
 0x49a   : > { %2700 = vrot.lane.b32.xlu0 %v2429_v18, %s4100_s12 }
 0x49c   : > { %2702 = vrot.lane.b32.xlu1 %v2432_v15, %s4100_s12 }
 0x49e   : > { %2696 = vrot.lane.b32.xlu0 %v2421_v20, %s4100_s12 }
 0x4a0   : > { %2698 = vrot.lane.b32.xlu1 %v2424_v21, %s4100_s12 }
 0x4a2   : > { %2760 = vrot.lane.b32.xlu0 %v2578_v24, %s4101_s13  ;;  %v2081_v24 = vadd.f32 %v4737_v23, %v4872_v40 }
 0x4a4   : > { %2762 = vrot.lane.b32.xlu1 %v2581_v47, %s4101_s13 }
 0x4a6   : > { %2764 = vrot.lane.b32.xlu0 %v2586_v26, %s4101_s13  ;;  %v2084_v26 = vadd.f32 %v4743_v27, %v4872_v40 }
 0x4a8   : > { %2766 = vrot.lane.b32.xlu1 %v2589_v53, %s4101_s13 }
 0x4ba   : > { %v2613_v59 = vpop.permute.xlu1 %2612 }
 0x4bb   : > { %v2787_v50 = vsel %vm2784_vm2, %v2065_v42, %v2613_v59 }
 0x4bc   : > { %v2609_v28 = vpop.permute.xlu0 %2608 }
 0x4bd   : > { %v2785_v16 = vsel %vm2784_vm2, %v2057_v7, %v2609_v28 }
 0x4be   : > { %v2615_v3 = vpop.permute.xlu1 %2614 }
 0x4bf   : > { %v2788_v61 = vsel %vm2784_vm2, %v2068_v46, %v2615_v3 }
 0x4c0   : > { %v2611_v30 = vpop.permute.xlu0 %2610 }
 0x4c1   : > { %v2786_v15 = vsel %vm2784_vm2, %v2060_v4, %v2611_v30 }
 0x4c4   : > { %v2621_v5 = vpop.permute.xlu0 %2620 }
 0x4c5   : > { %v2791_v53 = vsel %vm2784_vm2, %v2081_v24, %v2621_v5  ;;  %v2073_v5 = vadd.f32 %v4740_v25, %v4872_v40 }
 0x4c6   : > { %v2623_v34 = vpop.permute.xlu1 %2622 }
 0x4c7   : > { %v2792_v30 = vsel %vm2784_vm2, %v2084_v26, %v2623_v34 }
 0x4c8   : > { %v4859_v60 = vpop.permute.xlu0 %2616 }
 0x4c9   : > { %v2789_v42 = vsel %vm2784_vm2, %v2073_v5, %v4859_v60 }
 0x4ca   : > { %v4861_v55 = vpop.permute.xlu1 %2618 }
 0x4cc   : > { %v4863_v37 = vpop.permute.xlu0 %2628 }
 0x4ce   : > { %v4865_v38 = vpop.permute.xlu1 %2630 }
 0x4d0   : > { %v4867_v6 = vpop.permute.xlu0 %2624 }
 0x4d2   : > { %v4874_v41 = vpop.permute.xlu1 %2626 }
 0x4d4   : > { %v2637_v43 = vpop.permute.xlu0 %2636 }
 0x4d5   : > { %v4881_v8 = vsel %vm2784_vm2, %v2113_v31, %v2637_v43 }
 0x4d6   : > { %v2639_v45 = vpop.permute.xlu1 %2638 }
 0x4d7   : > { %v4884_v12 = vsel %vm2784_vm2, %v2116_v44, %v2639_v45 }
 0x4d8   : > { %v4886_v9 = vpop.permute.xlu0 %2632 }
 0x4da   : > { %v4888_v36 = vpop.permute.xlu1 %2634 }
 0x4dc   : > { %v2677_v10 = vpop.permute.xlu0 %2676 }
 0x4dd   : > { %v2803_v57 = vsel %vm246_vm0, %v2787_v50, %v2677_v10  ;;  %v2076_v10 = vadd.f32 %v4747_v29, %v4872_v40 }
 0x4de   : > { %v2679_v48 = vpop.permute.xlu1 %2678 }
 0x4df   : > { %v2804_v63 = vsel %vm246_vm0, %v2788_v61, %v2679_v48  ;;  %v2790_v50 = vsel %vm2784_vm2, %v2076_v10, %v4861_v55 }
 0x4e0   : > { %v2741_v58 = vpop.permute.xlu0 %2740 }
 0x4e1   : > { %v2820_v62 = vsel %vm2817_vm3, %v2803_v57, %v2741_v58 }
 0x4e2   : > { %v2836_v13 = vsel %vm430_vm1, %v2820_v62, 0.0  ;;  %v2743_v0 = vpop.permute.xlu1 %2742 }
 0x4e3   : > { %2852 = vst [vmem:[%s4903_s22 + $0x10] sm:$0xff] %v2836_v13  ;;  %v2821_v33 = vsel %vm2817_vm3, %v2804_v63, %v2743_v0  ;;  %v2097_v63 = vadd.f32 %v4751_v32, %v4872_v40  ;;  %v2100_v13 = vadd.f32 %v4759_v35, %v4872_v40 }
 0x4e4   : > { %v2837_v1 = vsel %vm430_vm1, %v2821_v33, 0.0  ;;  %v2673_v2 = vpop.permute.xlu0 %2672 }
 0x4e5   : > { %2853 = vst [vmem:[%s4903_s22 + $0x18] sm:$0xff] %v2837_v1  ;;  %v2801_v11 = vsel %vm246_vm0, %v2785_v16, %v2673_v2  ;;  %v2795_v0 = vsel %vm2784_vm2, %v2097_v63, %v4863_v37  ;;  %v2796_v2 = vsel %vm2784_vm2, %v2100_v13, %v4865_v38 }
 0x4e6   : > { %v2675_v14 = vpop.permute.xlu1 %2674 }
 0x4e7   : > { %v2802_v52 = vsel %vm246_vm0, %v2786_v15, %v2675_v14 }
 0x4e8   : > { %v2737_v18 = vpop.permute.xlu0 %2736 }
 0x4e9   : > { %v2818_v51 = vsel %vm2817_vm3, %v2801_v11, %v2737_v18  ;;  %v2089_v11 = vadd.f32 %v4755_v19, %v4872_v40  ;;  %v2092_v18 = vadd.f32 %v4763_v39, %v4872_v40 }
 0x4ea   : > { %v2834_v20 = vsel %vm430_vm1, %v2818_v51, 0.0  ;;  %v2739_v17 = vpop.permute.xlu1 %2738 }
 0x4eb   : > { %2850 = vst [vmem:[%s4903_s22] sm:$0xff] %v2834_v20  ;;  %v2819_v21 = vsel %vm2817_vm3, %v2802_v52, %v2739_v17  ;;  %v2793_v15 = vsel %vm2784_vm2, %v2089_v11, %v4867_v6  ;;  %v2794_v20 = vsel %vm2784_vm2, %v2092_v18, %v4874_v41  ;;  %v2105_v41 = vadd.f32 %v4774_v49, %v4872_v40 }
 0x4ec   : > { %v2835_v56 = vsel %vm430_vm1, %v2819_v21, 0.0  ;;  %v2685_v22 = vpop.permute.xlu0 %2684 }
 0x4ed   : > { %2851 = vst [vmem:[%s4903_s22 + $0x8] sm:$0xff] %v2835_v56  ;;  %v2807_v59 = vsel %vm246_vm0, %v2791_v53, %v2685_v22  ;;  %v2108_v53 = vadd.f32 %v4782_v54, %v4872_v40 }
 0x4ee   : > { %v2687_v47 = vpop.permute.xlu1 %2686 }
 0x4ef   : > { %v2808_v31 = vsel %vm246_vm0, %v2792_v30, %v2687_v47 }
 0x4f0   : > { %v2749_v28 = vpop.permute.xlu0 %2748 }
 0x4f1   : > { %v2824_v3 = vsel %vm2817_vm3, %v2807_v59, %v2749_v28  ;;  %v2797_v59 = vsel %vm2784_vm2, %v2105_v41, %v4886_v9 }
 0x4f2   : > { %v2840_v43 = vsel %vm430_vm1, %v2824_v3, 0.0  ;;  %v2751_v23 = vpop.permute.xlu1 %2750  ;;  %v2798_v3 = vsel %vm2784_vm2, %v2108_v53, %v4888_v36 }
 0x4f3   : > { %2856 = vst [vmem:[%s4903_s22 + $0x30] sm:$0xff] %v2840_v43  ;;  %v2825_v44 = vsel %vm2817_vm3, %v2808_v31, %v2751_v23 }
 0x4f4   : > { %v2841_v27 = vsel %vm430_vm1, %v2825_v44, 0.0  ;;  %v2681_v45 = vpop.permute.xlu0 %2680 }
 0x4f5   : > { %2857 = vst [vmem:[%s4903_s22 + $0x38] sm:$0xff] %v2841_v27  ;;  %v2805_v48 = vsel %vm246_vm0, %v2789_v42, %v2681_v45 }
 0x4f6   : > { %v2683_v34 = vpop.permute.xlu1 %2682 }
 0x4f7   : > { %v2806_v58 = vsel %vm246_vm0, %v2790_v50, %v2683_v34 }
 0x4f8   : > { %v2745_v46 = vpop.permute.xlu0 %2744 }
 0x4f9   : > { %v2822_v57 = vsel %vm2817_vm3, %v2805_v48, %v2745_v46 }
 0x4fa   : > { %v2838_v25 = vsel %vm430_vm1, %v2822_v57, 0.0  ;;  %v2747_v61 = vpop.permute.xlu1 %2746 }
 0x4fb   : > { %2854 = vst [vmem:[%s4903_s22 + $0x20] sm:$0xff] %v2838_v25  ;;  %v2823_v29 = vsel %vm2817_vm3, %v2806_v58, %v2747_v61 }
 0x4fc   : > { %v2839_v62 = vsel %vm430_vm1, %v2823_v29, 0.0  ;;  %v2693_v60 = vpop.permute.xlu0 %2692 }
 0x4fd   : > { %2855 = vst [vmem:[%s4903_s22 + $0x28] sm:$0xff] %v2839_v62  ;;  %v2811_v33 = vsel %vm246_vm0, %v2795_v0, %v2693_v60 }
 0x4fe   : > { %v2695_v55 = vpop.permute.xlu1 %2694 }
 0x4ff   : > { %v2812_v14 = vsel %vm246_vm0, %v2796_v2, %v2695_v55 }
 0x500   : > { %v2757_v1 = vpop.permute.xlu0 %2756 }
 0x501   : > { %v2828_v7 = vsel %vm2817_vm3, %v2811_v33, %v2757_v1 }
 0x502   : > { %v2844_v32 = vsel %vm430_vm1, %v2828_v7, 0.0  ;;  %v2759_v4 = vpop.permute.xlu1 %2758 }
 0x503   : > { %2860 = vst [vmem:[%s4903_s22 + $0x50] sm:$0xff] %v2844_v32  ;;  %v2829_v35 = vsel %vm2817_vm3, %v2812_v14, %v2759_v4 }
 0x504   : > { %v2845_v16 = vsel %vm430_vm1, %v2829_v35, 0.0  ;;  %v2689_v37 = vpop.permute.xlu0 %2688 }
 0x505   : > { %2861 = vst [vmem:[%s4903_s22 + $0x58] sm:$0xff] %v2845_v16  ;;  %v2809_v51 = vsel %vm246_vm0, %v2793_v15, %v2689_v37 }
 0x506   : > { %v2691_v38 = vpop.permute.xlu1 %2690 }
 0x507   : > { %v2810_v21 = vsel %vm246_vm0, %v2794_v20, %v2691_v38 }
 0x508   : > { %v2753_v52 = vpop.permute.xlu0 %2752 }
 0x509   : > { %v2826_v17 = vsel %vm2817_vm3, %v2809_v51, %v2753_v52 }
 0x50a   : > { %v2842_v19 = vsel %vm430_vm1, %v2826_v17, 0.0  ;;  %v2755_v56 = vpop.permute.xlu1 %2754 }
 0x50b   : > { %2858 = vst [vmem:[%s4903_s22 + $0x40] sm:$0xff] %v2842_v19  ;;  %v2827_v22 = vsel %vm2817_vm3, %v2810_v21, %v2755_v56 }
 0x50c   : > { %v2843_v39 = vsel %vm430_vm1, %v2827_v22, 0.0  ;;  %v2701_v6 = vpop.permute.xlu0 %2700 }
 0x50d   : > { %2859 = vst [vmem:[%s4903_s22 + $0x48] sm:$0xff] %v2843_v39  ;;  %v2815_v40 = vsel %vm246_vm0, %v4881_v8, %v2701_v6 }
 0x50e   : > { %v2703_v24 = vpop.permute.xlu1 %2702 }
 0x50f   : > { %v2816_v27 = vsel %vm246_vm0, %v4884_v12, %v2703_v24 }
 0x510   : > { %v2697_v47 = vpop.permute.xlu0 %2696 }
 0x511   : > { %v2813_v28 = vsel %vm246_vm0, %v2797_v59, %v2697_v47 }
 0x512   : > { %v2699_v26 = vpop.permute.xlu1 %2698 }
 0x513   : > { %v2814_v43 = vsel %vm246_vm0, %v2798_v3, %v2699_v26 }
 0x514   : > { %v2761_v30 = vpop.permute.xlu0 %2760 }
 0x515   : > { %v2830_v31 = vsel %vm2817_vm3, %v2813_v28, %v2761_v30 }
 0x516   : > { %v2846_v49 = vsel %vm430_vm1, %v2830_v31, 0.0  ;;  %v2763_v23 = vpop.permute.xlu1 %2762 }
 0x517   : > { %2862 = vst [vmem:[%s4903_s22 + $0x60] sm:$0xff] %v2846_v49  ;;  %v2831_v54 = vsel %vm2817_vm3, %v2814_v43, %v2763_v23 }
 0x518   : > { %v2847_v9 = vsel %vm430_vm1, %v2831_v54, 0.0  ;;  %v2765_v36 = vpop.permute.xlu0 %2764 }
 0x519   : > { %2863 = vst [vmem:[%s4903_s22 + $0x68] sm:$0xff] %v2847_v9  ;;  %v2832_v44 = vsel %vm2817_vm3, %v2815_v40, %v2765_v36 }
 0x51a   : > { %v2848_v45 = vsel %vm430_vm1, %v2832_v44, 0.0  ;;  %v2767_v5 = vpop.permute.xlu1 %2766 }
 0x51b   : > { %2864 = vst [vmem:[%s4903_s22 + $0x70] sm:$0xff] %v2848_v45  ;;  %v2833_v8 = vsel %vm2817_vm3, %v2816_v27, %v2767_v5 }
 0x51c   : > { %v2849_v34 = vsel %vm430_vm1, %v2833_v8, 0.0 }
 0x51d   : > { %2865 = vst [vmem:[%s4903_s22 + $0x78] sm:$0xff] %v2849_v34 }
 0x51e   : > { %4050 = shalt.err (!%p4047_p3)
}
 0x51f   : > { %s4051_s9 = scalar_lea.hbm %s5012_s29, 2048  ;;  %s4055_s12 = scalar_lea.hbm %s5066_s4, 4096 }
 0x520   : > { %p4052_p4 = scmp.ne.s32.totalorder %s5012_s29, %s4051_s9  ;;  %p4056_p9 = scmp.lt.s32.totalorder %s5012_s29, %s5066_s4 }
 0x521   : > { %p4057_p10 = scmp.lt.s32.totalorder %s4055_s12, %s4051_s9 }
 0x522   : > { %p4053_p7 = pnand %p4052_p4, %p4168_p5 }
 0x523   : > { %p4058_p11 = por %p4057_p10, %p4056_p9 }
 0x524   : > { %p4054_p8 = pneg %p4053_p7 }
 0x526   : > { %p4059_p12 = pnand %p4058_p11, %p4054_p8 }
 0x528   : > { %4062 = shalt.err (!%p4059_p12)
}
 0x529   : > { %s4103_s20 = smov 128   ;;  %s4104_s22 = smov 8  }
 0x52a   : > { %3619 = dma.vmem_to_hbm [thread:$0]  (%p4168_p5), %s5014_s27, 2048, %s5012_s29, %s5022_s30, %s4103_s20, %s4103_s20, %s4104_s22  }
 0x52b PF: > { %p3625_p13 = scmp.ge.s32.totalorder %s4097_s18, 2  ;;  %s2895_s23 = sand.u32 1, %s4085_s15  }
 0x52c   : > { %s2896_s28 = scalar_lea.sflag [#allocation3], %s2895_s23 }
 0x52d   : > { %p3622_p0 = pnand %p3625_p13, %p4172_p6 }
 0x52f   : > { %p3623_p1 = pneg %p3622_p0 }
 0x531   : > { %4080 = dma.done.wait (%p3623_p1), %s2896_s28, 2048  }
 0x532   : > { %4082 = vsyncadd (%p3623_p1), %s2896_s28, 4294965248  ;;  %p14_p2 = scmp.ge.s32.totalorder %s4155_s21, 4   ;;  %s5069_s15 = smov %s4089_s16 }
 0x533   : > { %s5070_s16 = smov %s4093_s17  ;;  %s5071_s17 = smov %s4166_s24 }
 0x534   : > { %s5072_s18 = smov %s4155_s21  ;;  %16 = sbr.rel (!%p14_p2) target bundleno = 3 (0x3), region = 71 }
 0x539   :  { %2901 = vsyncpa [#allocation3], 1 }
 0x53a   :  { %2903 = vsyncpa [#allocation3 + $0x1], 1 }

</bundles_post_ra>
